<compile_context>
chip_gen: v5e
topology: v5e:2x2
jax: 0.10.0
libtpu: 0.0.40
codegen_flags: <defaults>
</compile_context>

<pallas_src>
import functools

import numpy as np
import jax
import jax.numpy as jnp
from jax import lax
from jax.experimental import pallas as pl
from jax.experimental.pallas import tpu as pltpu

N_JOINTS = 16
N_BONES = 15
INPUT_SIZE = N_JOINTS * 3          # 48
NOISE_CH = 48
HIDDEN = 256
NUM_STAGE = 2
LEAKY_SLOPE = 0.01
BN_EPS = 1e-5
NORM_EPS = 1e-12                   # keeps rsqrt finite for degenerate / pad rows
IN_W = 128                         # packed input:  pose(48)|noise(48)|root(3)|pad(29)
OUT_W = 128                        # packed output: pose(48)|ba(15)|pad(65)

# Standard 16-joint H36M skeleton used by PoseAug: bone = child - parent.
BONES = [(0, 1), (1, 2), (2, 3),
         (0, 4), (4, 5), (5, 6),
         (0, 7), (7, 8), (8, 9),
         (8, 10), (10, 11), (11, 12),
         (8, 13), (13, 14), (14, 15)]


def _structural_matrices():
    """Joint<->bone conversion matrices (flattened, coord-minor) + packing helpers."""
    C = np.zeros((N_JOINTS, N_BONES), np.float32)          # bone = child - parent
    for b, (p, c) in enumerate(BONES):
        C[c, b] = 1.0
        C[p, b] = -1.0
    parent = {c: p for (p, c) in BONES}
    bone_of_child = {c: b for b, (p, c) in enumerate(BONES)}
    Cinv = np.zeros((N_BONES, N_JOINTS), np.float32)       # pose[j] = sum bones root->j
    for j in range(1, N_JOINTS):
        k = j
        while k != 0:
            Cinv[bone_of_child[k], j] = 1.0
            k = parent[k]
    I3 = np.eye(3, dtype=np.float32)
    Cb = np.kron(C, I3)                                    # (48, 45) flat pose -> flat bones
    Cinvb = np.kron(Cinv, I3)                              # (45, 48) flat bones -> flat pose
    G45 = np.kron(np.eye(N_BONES, dtype=np.float32),
                  np.ones((3, 3), np.float32))             # per-bone sum-of-3 (coord broadcast)
    S = np.kron(np.eye(N_BONES, dtype=np.float32),
                np.ones((3, 1), np.float32))               # (45, 15) per-bone sum-of-3

    # Packed-slab versions (no lane slicing inside the kernel; zero pad rows/cols).
    CB = np.zeros((IN_W, 3 * N_BONES), np.float32)
    CB[:INPUT_SIZE] = Cb
    CINV = np.zeros((3 * N_BONES, OUT_W), np.float32)      # pose -> cols 0:48
    CINV[:, :INPUT_SIZE] = Cinvb
    SEL = np.zeros((3 * N_BONES, OUT_W), np.float32)       # -cos -> cols 48:63
    SEL[:, INPUT_SIZE:INPUT_SIZE + N_BONES] = -S
    ROOT = np.zeros((IN_W, OUT_W), np.float32)             # tile root into cols 0:48
    for j in range(N_JOINTS):
        for d in range(3):
            ROOT[INPUT_SIZE + NOISE_CH + d, 3 * j + d] = 1.0
    CONST = np.zeros((1, OUT_W), np.float32)               # the "1" of ba = 1 - cos
    CONST[0, INPUT_SIZE:INPUT_SIZE + N_BONES] = 1.0
    return C, Cinv, CB, G45, CINV, SEL, ROOT, CONST


(_C_J2B, _CINV_B2J, _CB, _G45, _CINV, _SEL, _ROOT, _CONST) = _structural_matrices()


# ------------------------------- Pallas kernel -------------------------------

def bagen_kernel(xin_ref,
                 w1_ref, b1_ref, g1_ref, be1_ref,
                 sw_ref, sb_ref, sg_ref, sbe_ref,
                 w2_ref, b2_ref,
                 cb_ref, g45_ref, cinv_ref, sel_ref, root_ref, const_ref,
                 out_ref, *, n_valid):
    f32 = jnp.float32
    bf16 = jnp.bfloat16
    inv_n = np.float32(1.0 / n_valid)

    xin = xin_ref[...]                                   # (Npad, 128) f32
    npad = xin.shape[0]

    # Rows >= n_valid are zero padding; exclude them from BatchNorm statistics.
    valid = (lax.broadcasted_iota(jnp.int32, (1, npad), 1) < n_valid).astype(f32)

    def bn_lrelu(y, gamma, beta):
        # Batch reductions offloaded to the MXU (frees the binding VALU slot);
        # single-pass stats folded into one scale/shift.
        mu = jnp.dot(valid, y, preferred_element_type=f32) * inv_n        # (1, H)
        msq = jnp.dot(valid, y * y, preferred_element_type=f32) * inv_n   # (1, H)
        var = msq - mu * mu
        scale = gamma * lax.rsqrt(var + BN_EPS)
        shift = beta - mu * scale
        y = y * scale + shift
        return jnp.maximum(y, LEAKY_SLOPE * y)           # LeakyReLU: mul + max

    # ---- MLP hot path: bf16 MXU matmuls, f32 accumulate, f32 elementwise ----
    y = jnp.dot(xin.astype(bf16), w1_ref[...], preferred_element_type=f32) + b1_ref[...]
    y = bn_lrelu(y, g1_ref[...], be1_ref[...])
    for idx in range(2 * NUM_STAGE):                     # 2 stages x (Linear+BN+LReLU) x 2
        y = jnp.dot(y.astype(bf16), sw_ref[idx], preferred_element_type=f32) + sb_ref[idx]
        y = bn_lrelu(y, sg_ref[idx], sbe_ref[idx])
    y = jnp.dot(y.astype(bf16), w2_ref[...], preferred_element_type=f32) + b2_ref[...]  # (Npad, 45)

    # ---- bone decomposition (f32 geometry), kept below the MLP to cut live ranges ----
    bones = jnp.dot(xin, cb_ref[...], preferred_element_type=f32)          # (Npad, 45)
    sumsq = jnp.dot(bones * bones, g45_ref[...], preferred_element_type=f32)
    inv_len = lax.rsqrt(sumsq + NORM_EPS)                # EUP rsqrt; no sqrt+divide
    bones_unit = bones * inv_len
    blen = sumsq * inv_len                               # == sqrt(sumsq)

    # ---- bone-angle modification epilogue (f32) ----
    modified = bones_unit + y
    m_sumsq = jnp.dot(modified * modified, g45_ref[...], preferred_element_type=f32)
    mod_unit = modified * lax.rsqrt(m_sumsq + NORM_EPS)

    col = lax.broadcasted_iota(jnp.int32, (1, 3 * N_BONES), 1)
    keep = jnp.logical_or(col < 6 * 3, col >= 8 * 3)     # bones 6,7 (torso) never modified
    mod_unit = jnp.where(keep, mod_unit, bones_unit)

    prod = mod_unit * bones_unit                         # per-coord cosine contributions
    mod_bone = mod_unit * blen

    # Lane-dense 128-wide packed store: cols 0:48 pose(+root), 48:63 = 1-cos, rest pad.
    out_ref[...] = (jnp.dot(mod_bone, cinv_ref[...], preferred_element_type=f32)
                    + jnp.dot(xin, root_ref[...], preferred_element_type=f32)
                    + jnp.dot(prod, sel_ref[...], preferred_element_type=f32)
                    + const_ref[...])


# ------------------------------- wrapper --------------------------------------

def init_params(key):
    """Synthetic parameters (PyTorch nn.Linear-style init); matmul weights in bf16."""
    def linear(k, fan_in, fan_out):
        kw, kb = jax.random.split(k)
        bound = 1.0 / np.sqrt(fan_in)
        w = jax.random.uniform(kw, (fan_in, fan_out), jnp.float32, -bound, bound)
        b = jax.random.uniform(kb, (1, fan_out), jnp.float32, -bound, bound)
        return w, b

    n_lin = 2 + 2 * NUM_STAGE
    ks = jax.random.split(key, n_lin)
    w1, b1 = linear(ks[0], INPUT_SIZE + NOISE_CH, HIDDEN)
    # Zero rows for the root coords (96:99) and the lane padding (99:128) of the
    # 128-wide input slab, so the kernel needs no lane slicing before the MXU.
    w1p = jnp.zeros((IN_W, HIDDEN), jnp.float32).at[:INPUT_SIZE + NOISE_CH].set(w1)
    sws, sbs = [], []
    for i in range(2 * NUM_STAGE):
        w, b = linear(ks[1 + i], HIDDEN, HIDDEN)
        sws.append(w)
        sbs.append(b)
    w2, b2 = linear(ks[-1], HIDDEN, INPUT_SIZE - 3)
    return dict(
        w1=w1p.astype(jnp.bfloat16), b1=b1,
        g1=jnp.ones((1, HIDDEN), jnp.float32),
        be1=jnp.zeros((1, HIDDEN), jnp.float32),
        sw=jnp.stack(sws).astype(jnp.bfloat16),          # (4, 256, 256) bf16, x@W layout
        sb=jnp.stack(sbs),                               # (4, 1, 256) f32
        sg=jnp.ones((2 * NUM_STAGE, 1, HIDDEN), jnp.float32),
        sbe=jnp.zeros((2 * NUM_STAGE, 1, HIDDEN), jnp.float32),
        w2=w2.astype(jnp.bfloat16), b2=b2,
    )


def _vmem_limit_bytes():
    cap = 64 * 1024 * 1024                               # conservative default (v7x-sized)
    try:
        info = pltpu.get_tpu_info()
        cap = int(getattr(info, "vmem_capacity_bytes", cap)) or cap
    except Exception:
        pass
    # ~52 MiB on v7x (64 MiB physical), capped at ~100 MiB on v5e/v6e (128 MiB).
    return int(min(cap * 13 // 16, 100 * 1024 * 1024))


def ba_generator_forward(params, inputs_3d, noise):
    """inputs_3d: (N,16,3) f32; noise: (N,48) f32 -> (out (N,16,3), ba_diff (N,15))."""
    n = inputs_3d.shape[0]
    root = inputs_3d[:, :1, :]
    x_flat = (inputs_3d - root).reshape(n, INPUT_SIZE)                   # root-relative
    # Single packed input slab: [root-relative pose | noise | root] -> one DMA'd input.
    xin = jnp.concatenate([x_flat, noise, root.reshape(n, 3)], axis=1)   # (N, 99)
    # Pad lanes to 128 (aligned loads, one K tile) and rows to a multiple of 16
    # (bf16 sublane packing).  Pad rows are masked out of the BN statistics.
    npad = ((n + 15) // 16) * 16
    xin = jnp.pad(xin, ((0, npad - n), (0, IN_W - xin.shape[1])))

    consts = tuple(jnp.asarray(m) for m in (_CB, _G45, _CINV, _SEL, _ROOT, _CONST))
    inputs = (xin,
              params['w1'], params['b1'], params['g1'], params['be1'],
              params['sw'], params['sb'], params['sg'], params['sbe'],
              params['w2'], params['b2'],
              *consts)

    def full_spec(a):
        nd = a.ndim
        return pl.BlockSpec(a.shape, lambda i, nd=nd: (0,) * nd)

    # Single full-batch block: training-mode BatchNorm couples the whole batch,
    # so per-tile stats would change numerics; activations stay resident in VMEM.
    # TODO(synk): on v7x, split the batch over the 2 TensorCores (core_map +
    # CMEM/VMEM_SHARED exchange of the five (1,256) sum / sum-sq partials) instead
    # of this single-core grid.
    slab = pl.pallas_call(
        functools.partial(bagen_kernel, n_valid=n),
        grid=(1,),
        in_specs=[full_spec(a) for a in inputs],
        out_specs=pl.BlockSpec((npad, OUT_W), lambda i: (0, 0)),
        out_shape=jax.ShapeDtypeStruct((npad, OUT_W), jnp.float32),
        compiler_params=pltpu.CompilerParams(
            dimension_semantics=("arbitrary",),
            vmem_limit_bytes=_vmem_limit_bytes()),
    )(*inputs)

    out = slab[:n, :INPUT_SIZE].reshape(n, N_JOINTS, 3)
    ba = slab[:n, INPUT_SIZE:INPUT_SIZE + N_BONES]
    return out, ba


# ------------------------------- pure-JAX reference ---------------------------

def reference(params, inputs_3d, noise):
    """Module math in f32, with the kernel's intended bf16-input / f32-accumulate
    quantization applied at each linear layer so the check isolates kernel bugs
    from quantization noise (which training-mode BN over a small batch amplifies)."""
    n = inputs_3d.shape[0]
    f32, bf16 = jnp.float32, jnp.bfloat16
    root = inputs_3d[:, :1, :]
    x = inputs_3d - root
    C = jnp.asarray(_C_J2B)
    Cinv = jnp.asarray(_CINV_B2J)
    bones = jnp.einsum('njd,jb->nbd', x, C)                   # (N,15,3)
    blen = jnp.linalg.norm(bones, axis=2, keepdims=True)
    bunit = bones / blen

    def bn_lrelu(y, g, b):
        mu = y.mean(0, keepdims=True)
        var = ((y - mu) ** 2).mean(0, keepdims=True)
        y = (y - mu) / jnp.sqrt(var + BN_EPS) * g + b
        return jnp.where(y >= 0, y, LEAKY_SLOPE * y)

    def lin(y, w, b):
        return jnp.dot(y.astype(bf16), w, preferred_element_type=f32) + b

    x_flat = x.reshape(n, -1)
    w1 = params['w1'][:INPUT_SIZE + NOISE_CH]                 # drop the zero-pad rows
    y = lin(jnp.concatenate([x_flat, noise], 1), w1, params['b1'])
    y = bn_lrelu(y, params['g1'], params['be1'])
    for i in range(2 * NUM_STAGE):
        y = lin(y, params['sw'][i], params['sb'][i])
        y = bn_lrelu(y, params['sg'][i], params['sbe'][i])
    y = lin(y, params['w2'], params['b2']).reshape(n, N_BONES, 3)

    mod = bunit + y
    mod_unit = mod / jnp.linalg.norm(mod, axis=2, keepdims=True)
    mask = jnp.ones_like(bunit).at[:, jnp.array([6, 7]), :].set(0.0)
    mod_unit = mod_unit * mask + bunit * (1.0 - mask)
    ba = 1.0 - jnp.sum(mod_unit * bunit, axis=2)
    mod_bone = mod_unit * blen
    out = jnp.einsum('nbd,bj->njd', mod_bone, Cinv) + root
    return out, ba


if __name__ == "__main__":
    key = jax.random.PRNGKey(0)
    k_param, k_input, k_noise = jax.random.split(key, 3)
    N = 16
    params = init_params(k_param)
    inputs_3d = 0.5 * jax.random.normal(k_input, (N, N_JOINTS, 3), jnp.float32)
    # TODO(synk): torch.randn noise is generated inside forward in the PyTorch
    # module; here it is drawn deterministically in the wrapper and passed in.
    noise = jax.random.normal(k_noise, (N, NOISE_CH), jnp.float32)

    out, ba = ba_generator_forward(params, inputs_3d, noise)
    jax.block_until_ready((out, ba))

    ref_out, ref_ba = reference(params, inputs_3d, noise)
    assert out.shape == (N, N_JOINTS, 3) and ba.shape == (N, N_BONES)
    err_out = float(np.max(np.abs(np.asarray(out) - np.asarray(ref_out))))
    err_ba = float(np.max(np.abs(np.asarray(ba) - np.asarray(ref_ba))))
    assert err_out < 2e-2, f"pose max abs err {err_out}"
    assert err_ba < 2e-2, f"ba max abs err {err_ba}"
    print("KERNEL_OK")
</pallas_src>

<mosaic_0001>
module attributes {stable_mosaic.version = 11 : i64} {
  func.func @bagen_kernel(%arg0: i32, %arg1: memref<16x128xf32, #tpu.memory_space<vmem>>, %arg2: memref<128x256xbf16, #tpu.memory_space<vmem>>, %arg3: memref<1x256xf32, #tpu.memory_space<vmem>>, %arg4: memref<1x256xf32, #tpu.memory_space<vmem>>, %arg5: memref<1x256xf32, #tpu.memory_space<vmem>>, %arg6: memref<4x256x256xbf16, #tpu.memory_space<vmem>>, %arg7: memref<4x1x256xf32, #tpu.memory_space<vmem>>, %arg8: memref<4x1x256xf32, #tpu.memory_space<vmem>>, %arg9: memref<4x1x256xf32, #tpu.memory_space<vmem>>, %arg10: memref<256x45xbf16, #tpu.memory_space<vmem>>, %arg11: memref<1x45xf32, #tpu.memory_space<vmem>>, %arg12: memref<128x45xf32, #tpu.memory_space<vmem>>, %arg13: memref<45x45xf32, #tpu.memory_space<vmem>>, %arg14: memref<45x128xf32, #tpu.memory_space<vmem>>, %arg15: memref<45x128xf32, #tpu.memory_space<vmem>>, %arg16: memref<128x128xf32, #tpu.memory_space<vmem>>, %arg17: memref<1x128xf32, #tpu.memory_space<vmem>>, %arg18: memref<16x128xf32, #tpu.memory_space<vmem>>) attributes {dimension_semantics = [#tpu.dimension_semantics<arbitrary>], iteration_bounds = array<i64: 1>, scalar_prefetch = 0 : i64, scratch_operands = 0 : i64, tpu.core_type = #tpu.core_type<tc>, window_params = [{pipeline_mode = #tpu.pipeline_mode<synchronous>, transform_indices = @transform_0, window_bounds = array<i64: 16, 128>}, {pipeline_mode = #tpu.pipeline_mode<synchronous>, transform_indices = @transform_1, window_bounds = array<i64: 128, 256>}, {pipeline_mode = #tpu.pipeline_mode<synchronous>, transform_indices = @transform_2, window_bounds = array<i64: 1, 256>}, {pipeline_mode = #tpu.pipeline_mode<synchronous>, transform_indices = @transform_3, window_bounds = array<i64: 1, 256>}, {pipeline_mode = #tpu.pipeline_mode<synchronous>, transform_indices = @transform_4, window_bounds = array<i64: 1, 256>}, {pipeline_mode = #tpu.pipeline_mode<synchronous>, transform_indices = @transform_5, window_bounds = array<i64: 4, 256, 256>}, {pipeline_mode = #tpu.pipeline_mode<synchronous>, transform_indices = @transform_6, window_bounds = array<i64: 4, 1, 256>}, {pipeline_mode = #tpu.pipeline_mode<synchronous>, transform_indices = @transform_7, window_bounds = array<i64: 4, 1, 256>}, {pipeline_mode = #tpu.pipeline_mode<synchronous>, transform_indices = @transform_8, window_bounds = array<i64: 4, 1, 256>}, {pipeline_mode = #tpu.pipeline_mode<synchronous>, transform_indices = @transform_9, window_bounds = array<i64: 256, 45>}, {pipeline_mode = #tpu.pipeline_mode<synchronous>, transform_indices = @transform_10, window_bounds = array<i64: 1, 45>}, {pipeline_mode = #tpu.pipeline_mode<synchronous>, transform_indices = @transform_11, window_bounds = array<i64: 128, 45>}, {pipeline_mode = #tpu.pipeline_mode<synchronous>, transform_indices = @transform_12, window_bounds = array<i64: 45, 45>}, {pipeline_mode = #tpu.pipeline_mode<synchronous>, transform_indices = @transform_13, window_bounds = array<i64: 45, 128>}, {pipeline_mode = #tpu.pipeline_mode<synchronous>, transform_indices = @transform_14, window_bounds = array<i64: 45, 128>}, {pipeline_mode = #tpu.pipeline_mode<synchronous>, transform_indices = @transform_15, window_bounds = array<i64: 128, 128>}, {pipeline_mode = #tpu.pipeline_mode<synchronous>, transform_indices = @transform_16, window_bounds = array<i64: 1, 128>}, {pipeline_mode = #tpu.pipeline_mode<synchronous>, transform_indices = @transform_17, window_bounds = array<i64: 16, 128>}]} {
    %c0 = arith.constant 0 : index
    %c0_0 = arith.constant 0 : index
    %0 = vector.load %arg1[%c0, %c0_0] : memref<16x128xf32, #tpu.memory_space<vmem>>, vector<16x128xf32>
    %1 = tpu.iota {dimensions = array<i32: 1>} : vector<1x16xi32>
    %c16_i32 = arith.constant 16 : i32
    %2 = vector.broadcast %c16_i32 : i32 to vector<1x16xi32>
    %3 = arith.cmpi slt, %1, %2 : vector<1x16xi32>
    %4 = arith.extui %3 : vector<1x16xi1> to vector<1x16xi32>
    %5 = arith.sitofp %4 : vector<1x16xi32> to vector<1x16xf32>
    %6 = arith.truncf %0 : vector<16x128xf32> to vector<16x128xbf16>
    %c0_1 = arith.constant 0 : index
    %c0_2 = arith.constant 0 : index
    %7 = vector.load %arg2[%c0_1, %c0_2] : memref<128x256xbf16, #tpu.memory_space<vmem>>, vector<128x256xbf16>
    %cst = arith.constant dense<0.000000e+00> : vector<16x256xf32>
    %8 = tpu.matmul %6, %7, %cst {dimension_numbers = #tpu.dot_dimension_numbers<[1], [0], [0], [1], [0, 0, 1, 1], [], []>} : vector<16x128xbf16>, vector<128x256xbf16>, vector<16x256xf32> -> vector<16x256xf32>
    %c0_3 = arith.constant 0 : index
    %c0_4 = arith.constant 0 : index
    %9 = vector.load %arg3[%c0_3, %c0_4] : memref<1x256xf32, #tpu.memory_space<vmem>>, vector<1x256xf32>
    %10 = vector.broadcast %9 : vector<1x256xf32> to vector<16x256xf32>
    %11 = arith.addf %8, %10 : vector<16x256xf32>
    %c0_5 = arith.constant 0 : index
    %c0_6 = arith.constant 0 : index
    %12 = vector.load %arg4[%c0_5, %c0_6] : memref<1x256xf32, #tpu.memory_space<vmem>>, vector<1x256xf32>
    %c0_7 = arith.constant 0 : index
    %c0_8 = arith.constant 0 : index
    %13 = vector.load %arg5[%c0_7, %c0_8] : memref<1x256xf32, #tpu.memory_space<vmem>>, vector<1x256xf32>
    %cst_9 = arith.constant dense<0.000000e+00> : vector<1x256xf32>
    %14 = tpu.matmul %5, %11, %cst_9 {dimension_numbers = #tpu.dot_dimension_numbers<[1], [0], [0], [1], [0, 0, 1, 1], [], []>} : vector<1x16xf32>, vector<16x256xf32>, vector<1x256xf32> -> vector<1x256xf32>
    %cst_10 = arith.constant 6.250000e-02 : f32
    %15 = vector.broadcast %cst_10 : f32 to vector<1x256xf32>
    %16 = arith.mulf %14, %15 : vector<1x256xf32>
    %17 = arith.mulf %11, %11 : vector<16x256xf32>
    %cst_11 = arith.constant dense<0.000000e+00> : vector<1x256xf32>
    %18 = tpu.matmul %5, %17, %cst_11 {dimension_numbers = #tpu.dot_dimension_numbers<[1], [0], [0], [1], [0, 0, 1, 1], [], []>} : vector<1x16xf32>, vector<16x256xf32>, vector<1x256xf32> -> vector<1x256xf32>
    %cst_12 = arith.constant 6.250000e-02 : f32
    %19 = vector.broadcast %cst_12 : f32 to vector<1x256xf32>
    %20 = arith.mulf %18, %19 : vector<1x256xf32>
    %21 = arith.mulf %16, %16 : vector<1x256xf32>
    %22 = arith.subf %20, %21 : vector<1x256xf32>
    %cst_13 = arith.constant 9.99999974E-6 : f32
    %23 = vector.broadcast %cst_13 : f32 to vector<1x256xf32>
    %24 = arith.addf %22, %23 : vector<1x256xf32>
    %25 = math.rsqrt %24 : vector<1x256xf32>
    %26 = arith.mulf %12, %25 : vector<1x256xf32>
    %27 = arith.mulf %16, %26 : vector<1x256xf32>
    %28 = arith.subf %13, %27 : vector<1x256xf32>
    %29 = vector.broadcast %26 : vector<1x256xf32> to vector<16x256xf32>
    %30 = arith.mulf %11, %29 : vector<16x256xf32>
    %31 = vector.broadcast %28 : vector<1x256xf32> to vector<16x256xf32>
    %32 = arith.addf %30, %31 : vector<16x256xf32>
    %cst_14 = arith.constant 0.00999999977 : f32
    %33 = vector.broadcast %cst_14 : f32 to vector<16x256xf32>
    %34 = arith.mulf %33, %32 : vector<16x256xf32>
    %35 = arith.maximumf %32, %34 : vector<16x256xf32>
    %36 = arith.truncf %35 : vector<16x256xf32> to vector<16x256xbf16>
    %c0_15 = arith.constant 0 : index
    %c0_16 = arith.constant 0 : index
    %c0_17 = arith.constant 0 : index
    %37 = vector.load %arg6[%c0_15, %c0_16, %c0_17] : memref<4x256x256xbf16, #tpu.memory_space<vmem>>, vector<1x256x256xbf16>
    %38 = vector.shape_cast %37 : vector<1x256x256xbf16> to vector<256x256xbf16>
    %cst_18 = arith.constant dense<0.000000e+00> : vector<16x256xf32>
    %39 = tpu.matmul %36, %38, %cst_18 {dimension_numbers = #tpu.dot_dimension_numbers<[1], [0], [0], [1], [0, 0, 1, 1], [], []>} : vector<16x256xbf16>, vector<256x256xbf16>, vector<16x256xf32> -> vector<16x256xf32>
    %c0_19 = arith.constant 0 : index
    %c0_20 = arith.constant 0 : index
    %c0_21 = arith.constant 0 : index
    %40 = vector.load %arg7[%c0_19, %c0_20, %c0_21] : memref<4x1x256xf32, #tpu.memory_space<vmem>>, vector<1x1x256xf32>
    %41 = vector.shape_cast %40 : vector<1x1x256xf32> to vector<1x256xf32>
    %42 = vector.broadcast %41 : vector<1x256xf32> to vector<16x256xf32>
    %43 = arith.addf %39, %42 : vector<16x256xf32>
    %c0_22 = arith.constant 0 : index
    %c0_23 = arith.constant 0 : index
    %c0_24 = arith.constant 0 : index
    %44 = vector.load %arg8[%c0_22, %c0_23, %c0_24] : memref<4x1x256xf32, #tpu.memory_space<vmem>>, vector<1x1x256xf32>
    %45 = vector.shape_cast %44 : vector<1x1x256xf32> to vector<1x256xf32>
    %c0_25 = arith.constant 0 : index
    %c0_26 = arith.constant 0 : index
    %c0_27 = arith.constant 0 : index
    %46 = vector.load %arg9[%c0_25, %c0_26, %c0_27] : memref<4x1x256xf32, #tpu.memory_space<vmem>>, vector<1x1x256xf32>
    %47 = vector.shape_cast %46 : vector<1x1x256xf32> to vector<1x256xf32>
    %cst_28 = arith.constant dense<0.000000e+00> : vector<1x256xf32>
    %48 = tpu.matmul %5, %43, %cst_28 {dimension_numbers = #tpu.dot_dimension_numbers<[1], [0], [0], [1], [0, 0, 1, 1], [], []>} : vector<1x16xf32>, vector<16x256xf32>, vector<1x256xf32> -> vector<1x256xf32>
    %cst_29 = arith.constant 6.250000e-02 : f32
    %49 = vector.broadcast %cst_29 : f32 to vector<1x256xf32>
    %50 = arith.mulf %48, %49 : vector<1x256xf32>
    %51 = arith.mulf %43, %43 : vector<16x256xf32>
    %cst_30 = arith.constant dense<0.000000e+00> : vector<1x256xf32>
    %52 = tpu.matmul %5, %51, %cst_30 {dimension_numbers = #tpu.dot_dimension_numbers<[1], [0], [0], [1], [0, 0, 1, 1], [], []>} : vector<1x16xf32>, vector<16x256xf32>, vector<1x256xf32> -> vector<1x256xf32>
    %cst_31 = arith.constant 6.250000e-02 : f32
    %53 = vector.broadcast %cst_31 : f32 to vector<1x256xf32>
    %54 = arith.mulf %52, %53 : vector<1x256xf32>
    %55 = arith.mulf %50, %50 : vector<1x256xf32>
    %56 = arith.subf %54, %55 : vector<1x256xf32>
    %cst_32 = arith.constant 9.99999974E-6 : f32
    %57 = vector.broadcast %cst_32 : f32 to vector<1x256xf32>
    %58 = arith.addf %56, %57 : vector<1x256xf32>
    %59 = math.rsqrt %58 : vector<1x256xf32>
    %60 = arith.mulf %45, %59 : vector<1x256xf32>
    %61 = arith.mulf %50, %60 : vector<1x256xf32>
    %62 = arith.subf %47, %61 : vector<1x256xf32>
    %63 = vector.broadcast %60 : vector<1x256xf32> to vector<16x256xf32>
    %64 = arith.mulf %43, %63 : vector<16x256xf32>
    %65 = vector.broadcast %62 : vector<1x256xf32> to vector<16x256xf32>
    %66 = arith.addf %64, %65 : vector<16x256xf32>
    %cst_33 = arith.constant 0.00999999977 : f32
    %67 = vector.broadcast %cst_33 : f32 to vector<16x256xf32>
    %68 = arith.mulf %67, %66 : vector<16x256xf32>
    %69 = arith.maximumf %66, %68 : vector<16x256xf32>
    %70 = arith.truncf %69 : vector<16x256xf32> to vector<16x256xbf16>
    %c1 = arith.constant 1 : index
    %c0_34 = arith.constant 0 : index
    %c0_35 = arith.constant 0 : index
    %71 = vector.load %arg6[%c1, %c0_34, %c0_35] : memref<4x256x256xbf16, #tpu.memory_space<vmem>>, vector<1x256x256xbf16>
    %72 = vector.shape_cast %71 : vector<1x256x256xbf16> to vector<256x256xbf16>
    %cst_36 = arith.constant dense<0.000000e+00> : vector<16x256xf32>
    %73 = tpu.matmul %70, %72, %cst_36 {dimension_numbers = #tpu.dot_dimension_numbers<[1], [0], [0], [1], [0, 0, 1, 1], [], []>} : vector<16x256xbf16>, vector<256x256xbf16>, vector<16x256xf32> -> vector<16x256xf32>
    %c1_37 = arith.constant 1 : index
    %c0_38 = arith.constant 0 : index
    %c0_39 = arith.constant 0 : index
    %74 = vector.load %arg7[%c1_37, %c0_38, %c0_39] : memref<4x1x256xf32, #tpu.memory_space<vmem>>, vector<1x1x256xf32>
    %75 = vector.shape_cast %74 : vector<1x1x256xf32> to vector<1x256xf32>
    %76 = vector.broadcast %75 : vector<1x256xf32> to vector<16x256xf32>
    %77 = arith.addf %73, %76 : vector<16x256xf32>
    %c1_40 = arith.constant 1 : index
    %c0_41 = arith.constant 0 : index
    %c0_42 = arith.constant 0 : index
    %78 = vector.load %arg8[%c1_40, %c0_41, %c0_42] : memref<4x1x256xf32, #tpu.memory_space<vmem>>, vector<1x1x256xf32>
    %79 = vector.shape_cast %78 : vector<1x1x256xf32> to vector<1x256xf32>
    %c1_43 = arith.constant 1 : index
    %c0_44 = arith.constant 0 : index
    %c0_45 = arith.constant 0 : index
    %80 = vector.load %arg9[%c1_43, %c0_44, %c0_45] : memref<4x1x256xf32, #tpu.memory_space<vmem>>, vector<1x1x256xf32>
    %81 = vector.shape_cast %80 : vector<1x1x256xf32> to vector<1x256xf32>
    %cst_46 = arith.constant dense<0.000000e+00> : vector<1x256xf32>
    %82 = tpu.matmul %5, %77, %cst_46 {dimension_numbers = #tpu.dot_dimension_numbers<[1], [0], [0], [1], [0, 0, 1, 1], [], []>} : vector<1x16xf32>, vector<16x256xf32>, vector<1x256xf32> -> vector<1x256xf32>
    %cst_47 = arith.constant 6.250000e-02 : f32
    %83 = vector.broadcast %cst_47 : f32 to vector<1x256xf32>
    %84 = arith.mulf %82, %83 : vector<1x256xf32>
    %85 = arith.mulf %77, %77 : vector<16x256xf32>
    %cst_48 = arith.constant dense<0.000000e+00> : vector<1x256xf32>
    %86 = tpu.matmul %5, %85, %cst_48 {dimension_numbers = #tpu.dot_dimension_numbers<[1], [0], [0], [1], [0, 0, 1, 1], [], []>} : vector<1x16xf32>, vector<16x256xf32>, vector<1x256xf32> -> vector<1x256xf32>
    %cst_49 = arith.constant 6.250000e-02 : f32
    %87 = vector.broadcast %cst_49 : f32 to vector<1x256xf32>
    %88 = arith.mulf %86, %87 : vector<1x256xf32>
    %89 = arith.mulf %84, %84 : vector<1x256xf32>
    %90 = arith.subf %88, %89 : vector<1x256xf32>
    %cst_50 = arith.constant 9.99999974E-6 : f32
    %91 = vector.broadcast %cst_50 : f32 to vector<1x256xf32>
    %92 = arith.addf %90, %91 : vector<1x256xf32>
    %93 = math.rsqrt %92 : vector<1x256xf32>
    %94 = arith.mulf %79, %93 : vector<1x256xf32>
    %95 = arith.mulf %84, %94 : vector<1x256xf32>
    %96 = arith.subf %81, %95 : vector<1x256xf32>
    %97 = vector.broadcast %94 : vector<1x256xf32> to vector<16x256xf32>
    %98 = arith.mulf %77, %97 : vector<16x256xf32>
    %99 = vector.broadcast %96 : vector<1x256xf32> to vector<16x256xf32>
    %100 = arith.addf %98, %99 : vector<16x256xf32>
    %cst_51 = arith.constant 0.00999999977 : f32
    %101 = vector.broadcast %cst_51 : f32 to vector<16x256xf32>
    %102 = arith.mulf %101, %100 : vector<16x256xf32>
    %103 = arith.maximumf %100, %102 : vector<16x256xf32>
    %104 = arith.truncf %103 : vector<16x256xf32> to vector<16x256xbf16>
    %c2 = arith.constant 2 : index
    %c0_52 = arith.constant 0 : index
    %c0_53 = arith.constant 0 : index
    %105 = vector.load %arg6[%c2, %c0_52, %c0_53] : memref<4x256x256xbf16, #tpu.memory_space<vmem>>, vector<1x256x256xbf16>
    %106 = vector.shape_cast %105 : vector<1x256x256xbf16> to vector<256x256xbf16>
    %cst_54 = arith.constant dense<0.000000e+00> : vector<16x256xf32>
    %107 = tpu.matmul %104, %106, %cst_54 {dimension_numbers = #tpu.dot_dimension_numbers<[1], [0], [0], [1], [0, 0, 1, 1], [], []>} : vector<16x256xbf16>, vector<256x256xbf16>, vector<16x256xf32> -> vector<16x256xf32>
    %c2_55 = arith.constant 2 : index
    %c0_56 = arith.constant 0 : index
    %c0_57 = arith.constant 0 : index
    %108 = vector.load %arg7[%c2_55, %c0_56, %c0_57] : memref<4x1x256xf32, #tpu.memory_space<vmem>>, vector<1x1x256xf32>
    %109 = vector.shape_cast %108 : vector<1x1x256xf32> to vector<1x256xf32>
    %110 = vector.broadcast %109 : vector<1x256xf32> to vector<16x256xf32>
    %111 = arith.addf %107, %110 : vector<16x256xf32>
    %c2_58 = arith.constant 2 : index
    %c0_59 = arith.constant 0 : index
    %c0_60 = arith.constant 0 : index
    %112 = vector.load %arg8[%c2_58, %c0_59, %c0_60] : memref<4x1x256xf32, #tpu.memory_space<vmem>>, vector<1x1x256xf32>
    %113 = vector.shape_cast %112 : vector<1x1x256xf32> to vector<1x256xf32>
    %c2_61 = arith.constant 2 : index
    %c0_62 = arith.constant 0 : index
    %c0_63 = arith.constant 0 : index
    %114 = vector.load %arg9[%c2_61, %c0_62, %c0_63] : memref<4x1x256xf32, #tpu.memory_space<vmem>>, vector<1x1x256xf32>
    %115 = vector.shape_cast %114 : vector<1x1x256xf32> to vector<1x256xf32>
    %cst_64 = arith.constant dense<0.000000e+00> : vector<1x256xf32>
    %116 = tpu.matmul %5, %111, %cst_64 {dimension_numbers = #tpu.dot_dimension_numbers<[1], [0], [0], [1], [0, 0, 1, 1], [], []>} : vector<1x16xf32>, vector<16x256xf32>, vector<1x256xf32> -> vector<1x256xf32>
    %cst_65 = arith.constant 6.250000e-02 : f32
    %117 = vector.broadcast %cst_65 : f32 to vector<1x256xf32>
    %118 = arith.mulf %116, %117 : vector<1x256xf32>
    %119 = arith.mulf %111, %111 : vector<16x256xf32>
    %cst_66 = arith.constant dense<0.000000e+00> : vector<1x256xf32>
    %120 = tpu.matmul %5, %119, %cst_66 {dimension_numbers = #tpu.dot_dimension_numbers<[1], [0], [0], [1], [0, 0, 1, 1], [], []>} : vector<1x16xf32>, vector<16x256xf32>, vector<1x256xf32> -> vector<1x256xf32>
    %cst_67 = arith.constant 6.250000e-02 : f32
    %121 = vector.broadcast %cst_67 : f32 to vector<1x256xf32>
    %122 = arith.mulf %120, %121 : vector<1x256xf32>
    %123 = arith.mulf %118, %118 : vector<1x256xf32>
    %124 = arith.subf %122, %123 : vector<1x256xf32>
    %cst_68 = arith.constant 9.99999974E-6 : f32
    %125 = vector.broadcast %cst_68 : f32 to vector<1x256xf32>
    %126 = arith.addf %124, %125 : vector<1x256xf32>
    %127 = math.rsqrt %126 : vector<1x256xf32>
    %128 = arith.mulf %113, %127 : vector<1x256xf32>
    %129 = arith.mulf %118, %128 : vector<1x256xf32>
    %130 = arith.subf %115, %129 : vector<1x256xf32>
    %131 = vector.broadcast %128 : vector<1x256xf32> to vector<16x256xf32>
    %132 = arith.mulf %111, %131 : vector<16x256xf32>
    %133 = vector.broadcast %130 : vector<1x256xf32> to vector<16x256xf32>
    %134 = arith.addf %132, %133 : vector<16x256xf32>
    %cst_69 = arith.constant 0.00999999977 : f32
    %135 = vector.broadcast %cst_69 : f32 to vector<16x256xf32>
    %136 = arith.mulf %135, %134 : vector<16x256xf32>
    %137 = arith.maximumf %134, %136 : vector<16x256xf32>
    %138 = arith.truncf %137 : vector<16x256xf32> to vector<16x256xbf16>
    %c3 = arith.constant 3 : index
    %c0_70 = arith.constant 0 : index
    %c0_71 = arith.constant 0 : index
    %139 = vector.load %arg6[%c3, %c0_70, %c0_71] : memref<4x256x256xbf16, #tpu.memory_space<vmem>>, vector<1x256x256xbf16>
    %140 = vector.shape_cast %139 : vector<1x256x256xbf16> to vector<256x256xbf16>
    %cst_72 = arith.constant dense<0.000000e+00> : vector<16x256xf32>
    %141 = tpu.matmul %138, %140, %cst_72 {dimension_numbers = #tpu.dot_dimension_numbers<[1], [0], [0], [1], [0, 0, 1, 1], [], []>} : vector<16x256xbf16>, vector<256x256xbf16>, vector<16x256xf32> -> vector<16x256xf32>
    %c3_73 = arith.constant 3 : index
    %c0_74 = arith.constant 0 : index
    %c0_75 = arith.constant 0 : index
    %142 = vector.load %arg7[%c3_73, %c0_74, %c0_75] : memref<4x1x256xf32, #tpu.memory_space<vmem>>, vector<1x1x256xf32>
    %143 = vector.shape_cast %142 : vector<1x1x256xf32> to vector<1x256xf32>
    %144 = vector.broadcast %143 : vector<1x256xf32> to vector<16x256xf32>
    %145 = arith.addf %141, %144 : vector<16x256xf32>
    %c3_76 = arith.constant 3 : index
    %c0_77 = arith.constant 0 : index
    %c0_78 = arith.constant 0 : index
    %146 = vector.load %arg8[%c3_76, %c0_77, %c0_78] : memref<4x1x256xf32, #tpu.memory_space<vmem>>, vector<1x1x256xf32>
    %147 = vector.shape_cast %146 : vector<1x1x256xf32> to vector<1x256xf32>
    %c3_79 = arith.constant 3 : index
    %c0_80 = arith.constant 0 : index
    %c0_81 = arith.constant 0 : index
    %148 = vector.load %arg9[%c3_79, %c0_80, %c0_81] : memref<4x1x256xf32, #tpu.memory_space<vmem>>, vector<1x1x256xf32>
    %149 = vector.shape_cast %148 : vector<1x1x256xf32> to vector<1x256xf32>
    %cst_82 = arith.constant dense<0.000000e+00> : vector<1x256xf32>
    %150 = tpu.matmul %5, %145, %cst_82 {dimension_numbers = #tpu.dot_dimension_numbers<[1], [0], [0], [1], [0, 0, 1, 1], [], []>} : vector<1x16xf32>, vector<16x256xf32>, vector<1x256xf32> -> vector<1x256xf32>
    %cst_83 = arith.constant 6.250000e-02 : f32
    %151 = vector.broadcast %cst_83 : f32 to vector<1x256xf32>
    %152 = arith.mulf %150, %151 : vector<1x256xf32>
    %153 = arith.mulf %145, %145 : vector<16x256xf32>
    %cst_84 = arith.constant dense<0.000000e+00> : vector<1x256xf32>
    %154 = tpu.matmul %5, %153, %cst_84 {dimension_numbers = #tpu.dot_dimension_numbers<[1], [0], [0], [1], [0, 0, 1, 1], [], []>} : vector<1x16xf32>, vector<16x256xf32>, vector<1x256xf32> -> vector<1x256xf32>
    %cst_85 = arith.constant 6.250000e-02 : f32
    %155 = vector.broadcast %cst_85 : f32 to vector<1x256xf32>
    %156 = arith.mulf %154, %155 : vector<1x256xf32>
    %157 = arith.mulf %152, %152 : vector<1x256xf32>
    %158 = arith.subf %156, %157 : vector<1x256xf32>
    %cst_86 = arith.constant 9.99999974E-6 : f32
    %159 = vector.broadcast %cst_86 : f32 to vector<1x256xf32>
    %160 = arith.addf %158, %159 : vector<1x256xf32>
    %161 = math.rsqrt %160 : vector<1x256xf32>
    %162 = arith.mulf %147, %161 : vector<1x256xf32>
    %163 = arith.mulf %152, %162 : vector<1x256xf32>
    %164 = arith.subf %149, %163 : vector<1x256xf32>
    %165 = vector.broadcast %162 : vector<1x256xf32> to vector<16x256xf32>
    %166 = arith.mulf %145, %165 : vector<16x256xf32>
    %167 = vector.broadcast %164 : vector<1x256xf32> to vector<16x256xf32>
    %168 = arith.addf %166, %167 : vector<16x256xf32>
    %cst_87 = arith.constant 0.00999999977 : f32
    %169 = vector.broadcast %cst_87 : f32 to vector<16x256xf32>
    %170 = arith.mulf %169, %168 : vector<16x256xf32>
    %171 = arith.maximumf %168, %170 : vector<16x256xf32>
    %172 = arith.truncf %171 : vector<16x256xf32> to vector<16x256xbf16>
    %c0_88 = arith.constant 0 : index
    %c0_89 = arith.constant 0 : index
    %173 = vector.load %arg10[%c0_88, %c0_89] : memref<256x45xbf16, #tpu.memory_space<vmem>>, vector<256x45xbf16>
    %cst_90 = arith.constant dense<0.000000e+00> : vector<16x45xf32>
    %174 = tpu.matmul %172, %173, %cst_90 {dimension_numbers = #tpu.dot_dimension_numbers<[1], [0], [0], [1], [0, 0, 1, 1], [], []>} : vector<16x256xbf16>, vector<256x45xbf16>, vector<16x45xf32> -> vector<16x45xf32>
    %c0_91 = arith.constant 0 : index
    %c0_92 = arith.constant 0 : index
    %175 = vector.load %arg11[%c0_91, %c0_92] : memref<1x45xf32, #tpu.memory_space<vmem>>, vector<1x45xf32>
    %176 = vector.broadcast %175 : vector<1x45xf32> to vector<16x45xf32>
    %177 = arith.addf %174, %176 : vector<16x45xf32>
    %c0_93 = arith.constant 0 : index
    %c0_94 = arith.constant 0 : index
    %178 = vector.load %arg12[%c0_93, %c0_94] : memref<128x45xf32, #tpu.memory_space<vmem>>, vector<128x45xf32>
    %cst_95 = arith.constant dense<0.000000e+00> : vector<16x45xf32>
    %179 = tpu.matmul %0, %178, %cst_95 {dimension_numbers = #tpu.dot_dimension_numbers<[1], [0], [0], [1], [0, 0, 1, 1], [], []>} : vector<16x128xf32>, vector<128x45xf32>, vector<16x45xf32> -> vector<16x45xf32>
    %180 = arith.mulf %179, %179 : vector<16x45xf32>
    %c0_96 = arith.constant 0 : index
    %c0_97 = arith.constant 0 : index
    %181 = vector.load %arg13[%c0_96, %c0_97] : memref<45x45xf32, #tpu.memory_space<vmem>>, vector<45x45xf32>
    %cst_98 = arith.constant dense<0.000000e+00> : vector<16x45xf32>
    %182 = tpu.matmul %180, %181, %cst_98 {dimension_numbers = #tpu.dot_dimension_numbers<[1], [0], [0], [1], [0, 0, 1, 1], [], []>} : vector<16x45xf32>, vector<45x45xf32>, vector<16x45xf32> -> vector<16x45xf32>
    %cst_99 = arith.constant 9.99999996E-13 : f32
    %183 = vector.broadcast %cst_99 : f32 to vector<16x45xf32>
    %184 = arith.addf %182, %183 : vector<16x45xf32>
    %185 = math.rsqrt %184 : vector<16x45xf32>
    %186 = arith.mulf %179, %185 : vector<16x45xf32>
    %187 = arith.mulf %182, %185 : vector<16x45xf32>
    %188 = arith.addf %186, %177 : vector<16x45xf32>
    %189 = arith.mulf %188, %188 : vector<16x45xf32>
    %c0_100 = arith.constant 0 : index
    %c0_101 = arith.constant 0 : index
    %190 = vector.load %arg13[%c0_100, %c0_101] : memref<45x45xf32, #tpu.memory_space<vmem>>, vector<45x45xf32>
    %cst_102 = arith.constant dense<0.000000e+00> : vector<16x45xf32>
    %191 = tpu.matmul %189, %190, %cst_102 {dimension_numbers = #tpu.dot_dimension_numbers<[1], [0], [0], [1], [0, 0, 1, 1], [], []>} : vector<16x45xf32>, vector<45x45xf32>, vector<16x45xf32> -> vector<16x45xf32>
    %cst_103 = arith.constant 9.99999996E-13 : f32
    %192 = vector.broadcast %cst_103 : f32 to vector<16x45xf32>
    %193 = arith.addf %191, %192 : vector<16x45xf32>
    %194 = math.rsqrt %193 : vector<16x45xf32>
    %195 = arith.mulf %188, %194 : vector<16x45xf32>
    %196 = tpu.iota {dimensions = array<i32: 1>} : vector<1x45xi32>
    %c18_i32 = arith.constant 18 : i32
    %197 = vector.broadcast %c18_i32 : i32 to vector<1x45xi32>
    %198 = arith.cmpi slt, %196, %197 : vector<1x45xi32>
    %c24_i32 = arith.constant 24 : i32
    %199 = vector.broadcast %c24_i32 : i32 to vector<1x45xi32>
    %200 = arith.cmpi sge, %196, %199 : vector<1x45xi32>
    %201 = arith.ori %198, %200 : vector<1x45xi1>
    %202 = vector.shape_cast %201 : vector<1x45xi1> to vector<1x45xi1>
    %203 = vector.broadcast %202 : vector<1x45xi1> to vector<16x45xi1>
    %204 = arith.select %203, %195, %186 : vector<16x45xi1>, vector<16x45xf32>
    %205 = arith.mulf %204, %186 : vector<16x45xf32>
    %206 = arith.mulf %204, %187 : vector<16x45xf32>
    %c0_104 = arith.constant 0 : index
    %c0_105 = arith.constant 0 : index
    %207 = vector.load %arg14[%c0_104, %c0_105] : memref<45x128xf32, #tpu.memory_space<vmem>>, vector<45x128xf32>
    %cst_106 = arith.constant dense<0.000000e+00> : vector<16x128xf32>
    %208 = tpu.matmul %206, %207, %cst_106 {dimension_numbers = #tpu.dot_dimension_numbers<[1], [0], [0], [1], [0, 0, 1, 1], [], []>} : vector<16x45xf32>, vector<45x128xf32>, vector<16x128xf32> -> vector<16x128xf32>
    %c0_107 = arith.constant 0 : index
    %c0_108 = arith.constant 0 : index
    %209 = vector.load %arg16[%c0_107, %c0_108] : memref<128x128xf32, #tpu.memory_space<vmem>>, vector<128x128xf32>
    %cst_109 = arith.constant dense<0.000000e+00> : vector<16x128xf32>
    %210 = tpu.matmul %0, %209, %cst_109 {dimension_numbers = #tpu.dot_dimension_numbers<[1], [0], [0], [1], [0, 0, 1, 1], [], []>} : vector<16x128xf32>, vector<128x128xf32>, vector<16x128xf32> -> vector<16x128xf32>
    %211 = arith.addf %208, %210 : vector<16x128xf32>
    %c0_110 = arith.constant 0 : index
    %c0_111 = arith.constant 0 : index
    %212 = vector.load %arg15[%c0_110, %c0_111] : memref<45x128xf32, #tpu.memory_space<vmem>>, vector<45x128xf32>
    %cst_112 = arith.constant dense<0.000000e+00> : vector<16x128xf32>
    %213 = tpu.matmul %205, %212, %cst_112 {dimension_numbers = #tpu.dot_dimension_numbers<[1], [0], [0], [1], [0, 0, 1, 1], [], []>} : vector<16x45xf32>, vector<45x128xf32>, vector<16x128xf32> -> vector<16x128xf32>
    %214 = arith.addf %211, %213 : vector<16x128xf32>
    %c0_113 = arith.constant 0 : index
    %c0_114 = arith.constant 0 : index
    %215 = vector.load %arg17[%c0_113, %c0_114] : memref<1x128xf32, #tpu.memory_space<vmem>>, vector<1x128xf32>
    %216 = vector.broadcast %215 : vector<1x128xf32> to vector<16x128xf32>
    %217 = arith.addf %214, %216 : vector<16x128xf32>
    %c0_115 = arith.constant 0 : index
    %c0_116 = arith.constant 0 : index
    %218 = vector.load %arg18[%c0_115, %c0_116] : memref<16x128xf32, #tpu.memory_space<vmem>>, vector<16x128xf32>
    tpu.vector_store %arg18[%c0_115, %c0_116], %217 {strides = array<i32>} : memref<16x128xf32, #tpu.memory_space<vmem>>, vector<16x128xf32>,
    return
  }
  func.func @transform_0(%arg0: i32) -> (i32, i32) {
    %c0_i32 = arith.constant 0 : i32
    %c0_i32_0 = arith.constant 0 : i32
    %c0_i32_1 = arith.constant 0 : i32
    return %c0_i32, %c0_i32_0 : i32, i32
  }
  func.func @transform_1(%arg0: i32) -> (i32, i32) {
    %c0_i32 = arith.constant 0 : i32
    %c0_i32_0 = arith.constant 0 : i32
    %c0_i32_1 = arith.constant 0 : i32
    return %c0_i32, %c0_i32_0 : i32, i32
  }
  func.func @transform_2(%arg0: i32) -> (i32, i32) {
    %c0_i32 = arith.constant 0 : i32
    %c0_i32_0 = arith.constant 0 : i32
    %c0_i32_1 = arith.constant 0 : i32
    return %c0_i32, %c0_i32_0 : i32, i32
  }
  func.func @transform_3(%arg0: i32) -> (i32, i32) {
    %c0_i32 = arith.constant 0 : i32
    %c0_i32_0 = arith.constant 0 : i32
    %c0_i32_1 = arith.constant 0 : i32
    return %c0_i32, %c0_i32_0 : i32, i32
  }
  func.func @transform_4(%arg0: i32) -> (i32, i32) {
    %c0_i32 = arith.constant 0 : i32
    %c0_i32_0 = arith.constant 0 : i32
    %c0_i32_1 = arith.constant 0 : i32
    return %c0_i32, %c0_i32_0 : i32, i32
  }
  func.func @transform_5(%arg0: i32) -> (i32, i32, i32) {
    %c0_i32 = arith.constant 0 : i32
    %c0_i32_0 = arith.constant 0 : i32
    %c0_i32_1 = arith.constant 0 : i32
    %c0_i32_2 = arith.constant 0 : i32
    return %c0_i32, %c0_i32_0, %c0_i32_1 : i32, i32, i32
  }
  func.func @transform_6(%arg0: i32) -> (i32, i32, i32) {
    %c0_i32 = arith.constant 0 : i32
    %c0_i32_0 = arith.constant 0 : i32
    %c0_i32_1 = arith.constant 0 : i32
    %c0_i32_2 = arith.constant 0 : i32
    return %c0_i32, %c0_i32_0, %c0_i32_1 : i32, i32, i32
  }
  func.func @transform_7(%arg0: i32) -> (i32, i32, i32) {
    %c0_i32 = arith.constant 0 : i32
    %c0_i32_0 = arith.constant 0 : i32
    %c0_i32_1 = arith.constant 0 : i32
    %c0_i32_2 = arith.constant 0 : i32
    return %c0_i32, %c0_i32_0, %c0_i32_1 : i32, i32, i32
  }
  func.func @transform_8(%arg0: i32) -> (i32, i32, i32) {
    %c0_i32 = arith.constant 0 : i32
    %c0_i32_0 = arith.constant 0 : i32
    %c0_i32_1 = arith.constant 0 : i32
    %c0_i32_2 = arith.constant 0 : i32
    return %c0_i32, %c0_i32_0, %c0_i32_1 : i32, i32, i32
  }
  func.func @transform_9(%arg0: i32) -> (i32, i32) {
    %c0_i32 = arith.constant 0 : i32
    %c0_i32_0 = arith.constant 0 : i32
    %c0_i32_1 = arith.constant 0 : i32
    return %c0_i32, %c0_i32_0 : i32, i32
  }
  func.func @transform_10(%arg0: i32) -> (i32, i32) {
    %c0_i32 = arith.constant 0 : i32
    %c0_i32_0 = arith.constant 0 : i32
    %c0_i32_1 = arith.constant 0 : i32
    return %c0_i32, %c0_i32_0 : i32, i32
  }
  func.func @transform_11(%arg0: i32) -> (i32, i32) {
    %c0_i32 = arith.constant 0 : i32
    %c0_i32_0 = arith.constant 0 : i32
    %c0_i32_1 = arith.constant 0 : i32
    return %c0_i32, %c0_i32_0 : i32, i32
  }
  func.func @transform_12(%arg0: i32) -> (i32, i32) {
    %c0_i32 = arith.constant 0 : i32
    %c0_i32_0 = arith.constant 0 : i32
    %c0_i32_1 = arith.constant 0 : i32
    return %c0_i32, %c0_i32_0 : i32, i32
  }
  func.func @transform_13(%arg0: i32) -> (i32, i32) {
    %c0_i32 = arith.constant 0 : i32
    %c0_i32_0 = arith.constant 0 : i32
    %c0_i32_1 = arith.constant 0 : i32
    return %c0_i32, %c0_i32_0 : i32, i32
  }
  func.func @transform_14(%arg0: i32) -> (i32, i32) {
    %c0_i32 = arith.constant 0 : i32
    %c0_i32_0 = arith.constant 0 : i32
    %c0_i32_1 = arith.constant 0 : i32
    return %c0_i32, %c0_i32_0 : i32, i32
  }
  func.func @transform_15(%arg0: i32) -> (i32, i32) {
    %c0_i32 = arith.constant 0 : i32
    %c0_i32_0 = arith.constant 0 : i32
    %c0_i32_1 = arith.constant 0 : i32
    return %c0_i32, %c0_i32_0 : i32, i32
  }
  func.func @transform_16(%arg0: i32) -> (i32, i32) {
    %c0_i32 = arith.constant 0 : i32
    %c0_i32_0 = arith.constant 0 : i32
    %c0_i32_1 = arith.constant 0 : i32
    return %c0_i32, %c0_i32_0 : i32, i32
  }
  func.func @transform_17(%arg0: i32) -> (i32, i32) {
    %c0_i32 = arith.constant 0 : i32
    %c0_i32_0 = arith.constant 0 : i32
    %c0_i32_1 = arith.constant 0 : i32
    return %c0_i32, %c0_i32_0 : i32, i32
  }
}

</mosaic_0001>

<bundles_post_ra>
// kernel: tpu_custom_call.1
= control target key start
LH: loop header
LB: loop body
LE: loop exit
PB: predicated region body
PF: predicated region fallthrough
CT: control target
= control target key end

     0   :  { %s4504_s0 = inlined_call_operand.hbm [shape: f32[16,128], index: 0, kind: input, shape index: {}]   ;;  %s4505_s1 = inlined_call_operand.vmem [shape: bf16[128,256], index: 1, kind: input, shape index: {}]   ;;  %s4506_s2 = inlined_call_operand.hbm [shape: f32[1,256], index: 2, kind: input, shape index: {}]   ;;  %s4507_s3 = inlined_call_operand.hbm [shape: f32[1,256], index: 3, kind: input, shape index: {}]   ;;  %s4508_s4 = inlined_call_operand.vmem [shape: f32[1,256], index: 4, kind: input, shape index: {}]   ;;  %s4509_s5 = inlined_call_operand.hbm [shape: bf16[4,256,256], index: 5, kind: input, shape index: {}]   ;;  %s4510_s6 = inlined_call_operand.hbm [shape: f32[4,1,256], index: 6, kind: input, shape index: {}]   ;;  %s4511_s7 = inlined_call_operand.hbm [shape: f32[4,1,256], index: 7, kind: input, shape index: {}]   ;;  %s4512_s8 = inlined_call_operand.hbm [shape: f32[4,1,256], index: 8, kind: input, shape index: {}]   ;;  %s4513_s9 = inlined_call_operand.vmem [shape: bf16[256,45], index: 9, kind: input, shape index: {}]   ;;  %s4514_s10 = inlined_call_operand.vmem [shape: f32[1,45], index: 10, kind: input, shape index: {}]   ;;  %s4515_s11 = inlined_call_operand.vmem [shape: f32[128,45], index: 11, kind: input, shape index: {}]   ;;  %s4516_s12 = inlined_call_operand.vmem [shape: f32[45,45], index: 12, kind: input, shape index: {}]   ;;  %s4517_s13 = inlined_call_operand.hbm [shape: f32[45,128], index: 13, kind: input, shape index: {}]   ;;  %s4518_s14 = inlined_call_operand.hbm [shape: f32[45,128], index: 14, kind: input, shape index: {}]   ;;  %s4519_s15 = inlined_call_operand.vmem [shape: f32[128,128], index: 15, kind: input, shape index: {}]   ;;  %s4520_s16 = inlined_call_operand.vmem [shape: f32[1,128], index: 16, kind: input, shape index: {}]   ;;  %s4521_s17 = inlined_call_operand.hbm [shape: f32[16,128], index: 17, kind: output, shape index: {}]  }
   0x1   :  { %4523 = sst [smem:[#allocation24_spill]] %s4504_s0 }
   0x2   :  { %4524 = sst [smem:[#allocation25_spill]] %s4505_s1 }
   0x3   :  { %22 = vsyncpa [#allocation3], 0 }
   0x4   :  { %23 = vsyncpa [#allocation6], 0 }
   0x5   :  { %24 = vsyncpa [#allocation9], 0 }
   0x6   :  { %25 = vsyncpa [#allocation12], 0 }
   0x7   :  { %26 = vsyncpa [#allocation15], 0  ;;  %s48_s26 = sshll.u32 %s4506_s2, 4  ;;  %s49_s26 = int_to_ptr.hbm [resolvable:$true] %s48_s26 }
   0x8   :  { %27 = vsyncpa [#allocation4], 0  ;;  %s3767_s27 = smov [#allocation5]   ;;  %s71_s30 = sshll.u32 %s4509_s5, 4  ;;  %s72_s30 = int_to_ptr.hbm [resolvable:$true] %s71_s30 }
   0x9   :  { %s50_s28 = sshll.u32 %s3767_s27, 4  ;;  %s3768_s18 = smov [#allocation8]   ;;  %s51_s28 = int_to_ptr.vmem [resolvable:$true] %s50_s28 }
   0xa   :  { %53 = dma.hbm_to_vmem [thread:$0]  %s49_s26, 32, %s51_s28, [#allocation6]  }
   0xb   :  { %s73_s19 = sshll.u32 %s3768_s18, 4  ;;  %s3769_s1 = smov 128   ;;  %s74_s19 = int_to_ptr.vmem [resolvable:$true] %s73_s19 }
   0xc   :  { %s3770_s20 = smov 8   ;;  %s97_s22 = sshll.u32 %s4511_s7, 4  ;;  %s98_s22 = int_to_ptr.hbm [resolvable:$true] %s97_s22 }
   0xd   :  { %79 = dma.hbm_to_vmem [thread:$0]  %s72_s30, 16384, %s74_s19, [#allocation9], %s3769_s1, %s3769_s1, %s3770_s20  }
   0xe   :  { %s3771_s23 = smov [#allocation11]   ;;  %s131_s26 = sshll.u32 %s4517_s13, 4  ;;  %s132_s26 = int_to_ptr.hbm [resolvable:$true] %s131_s26 }
   0xf   :  { %s99_s24 = sshll.u32 %s3771_s23, 4  ;;  %s3772_s27 = smov 32   ;;  %s100_s24 = int_to_ptr.vmem [resolvable:$true] %s99_s24 }
  0x10   :  { %s3773_s28 = smov 2   ;;  %s3774_s29 = smov [#allocation14]  }
  0x11   :  { %105 = dma.hbm_to_vmem [thread:$0]  %s98_s22, 128, %s100_s24, [#allocation12], %s3772_s27, %s3772_s27, %s3773_s28  }
  0x12   :  { %s133_s0 = sshll.u32 %s3774_s29, 4  ;;  %s4525_s7 = sld [smem:[#allocation24_spill]]  ;;  %s134_s0 = int_to_ptr.vmem [resolvable:$true] %s133_s0 }
  0x13   :  { %139 = dma.hbm_to_vmem [thread:$0]  %s132_s26, 768, %s134_s0, [#allocation15], %s3769_s1, %s3769_s1, %s3770_s20  }
  0x14   :  { %s59_s21 = sshll.u32 %s4507_s3, 4  ;;  %s3775_s23 = smov [#allocation2]   ;;  %s60_s21 = int_to_ptr.hbm [resolvable:$true] %s59_s21 }
  0x15   :  { %s34_s25 = sshll.u32 %s3775_s23, 4  ;;  %s3776_s22 = smov [#allocation7]   ;;  %s35_s25 = int_to_ptr.vmem [resolvable:$true] %s34_s25 }
  0x16   :  { %s61_s24 = sshll.u32 %s3776_s22, 4  ;;  %s84_s30 = sshll.u32 %s4510_s6, 4  ;;  %s62_s24 = int_to_ptr.vmem [resolvable:$true] %s61_s24  ;;  %s85_s30 = int_to_ptr.hbm [resolvable:$true] %s84_s30 }
  0x17   :  { %64 = dma.hbm_to_vmem [thread:$0]  %s60_s21, 32, %s62_s24, [#allocation6]  }
  0x18   :  { %s32_s19 = sshll.u32 %s4525_s7, 4  ;;  %s110_s3 = sshll.u32 %s4512_s8, 4  ;;  %s33_s19 = int_to_ptr.hbm [resolvable:$true] %s32_s19  ;;  %s111_s3 = int_to_ptr.hbm [resolvable:$true] %s110_s3 }
  0x19   :  { %40 = dma.hbm_to_vmem [thread:$0]  %s33_s19, 256, %s35_s25, [#allocation3], %s3769_s1, %s3769_s1, %s3770_s20  }
  0x1a   :  { %s3777_s18 = smov [#allocation10]   ;;  %s3778_s19 = smov [#allocation13]  }
  0x1b   :  { %s86_s7 = sshll.u32 %s3777_s18, 4  ;;  %s112_s13 = sshll.u32 %s3778_s19, 4  ;;  %s87_s7 = int_to_ptr.vmem [resolvable:$true] %s86_s7  ;;  %s113_s13 = int_to_ptr.vmem [resolvable:$true] %s112_s13 }
  0x1c   :  { %92 = dma.hbm_to_vmem [thread:$0]  %s85_s30, 128, %s87_s7, [#allocation9], %s3772_s27, %s3772_s27, %s3773_s28  }
  0x1d   :  { %s144_s6 = sshll.u32 %s4518_s14, 4  ;;  %s3779_s8 = smov [#allocation16]   ;;  %s145_s6 = int_to_ptr.hbm [resolvable:$true] %s144_s6 }
  0x1e   :  { %118 = dma.hbm_to_vmem [thread:$0]  %s111_s3, 128, %s113_s13, [#allocation12], %s3772_s27, %s3772_s27, %s3773_s28  }
  0x1f   :  { %s146_s21 = sshll.u32 %s3779_s8, 4  ;;  %s147_s21 = int_to_ptr.vmem [resolvable:$true] %s146_s21 }
  0x20   :  { %152 = dma.hbm_to_vmem [thread:$0]  %s145_s6, 768, %s147_s21, [#allocation15], %s3769_s1, %s3769_s1, %s3770_s20  }
  0x21   :  { %3755 = dma.done.wait [#allocation3], 256  }
  0x22   :  { %3756 = vsyncadd [#allocation3], 4294967040 }
  0x23   :  { %3757 = dma.done.wait [#allocation6], 64  }
  0x24   :  { %3758 = vsyncadd [#allocation6], 4294967232 }
  0x25   :  { %3759 = dma.done.wait [#allocation9], 16512  }
  0x26   :  { %3760 = vsyncadd [#allocation9], 4294950784 }
  0x27   :  { %3761 = dma.done.wait [#allocation12], 256  }
  0x28   :  { %3762 = vsyncadd [#allocation12], 4294967040 }
  0x29   :  { %3763 = dma.done.wait [#allocation15], 1536  }
  0x2a   :  { %3764 = vsyncadd [#allocation15], 4294965760  ;;  %s4526_s28 = sld [smem:[#allocation25_spill]]  ;;  %v193_v47 = vld [vmem:[#allocation2] sm:$0xff]  ;;  %v194_v48 = vld [vmem:[#allocation2 + $0x8] sm:$0xff]  ;;  %v195_v52 = vlaneseq  ;;  %v3780_v63 = vmov 0.0  }
  0x2b   :  { %v200_v50 = vpack.c.bf16 %v194_v48, %v193_v47  ;;  %v217_v55 = vld [vmem:[#allocation5] sm:$0x3]  ;;  %vm333_vm1 = vcmask 130048   ;;  %v3333_v47 = vld [vmem:[#allocation8 + $0x44] sm:$0xf0]  ;;  %vm454_vm7 = vcmask 1040384  }
  0x2c   :  { %v4016_v54 = vand.u32 127, %v195_v52  ;;  %v219_v56 = vperm.slane %v217_v55, 0  ;;  %v220_v57 = vperm.slane %v217_v55, 1  ;;  %v2802_v48 = vld [vmem:[#allocation8 + $0xc0] sm:$0xf]  ;;  %s2618_s14 = sshll.u32 %s4521_s17, 4  ;;  %s2619_s14 = int_to_ptr.hbm [resolvable:$true] %s2618_s14 }
  0x2d   :  { %v2740_v52 = vld [vmem:[#allocation8 + $0x48] sm:$0xf0] }
  0x2e   :  { %vm197_vm0 = vcmp.lt.s32.totalorder %v4016_v54, 16 }
  0x30   :  { %v2694_v0 = vld [vmem:[%s4526_s28 + $0x70] sm:$0xf]  ;;  %v3323_v1 = vld [vmem:[%s4526_s28 + $0x74] sm:$0xf0]  ;;  %v3322_v2 = vld [vmem:[%s4526_s28 + $0x74] sm:$0xf] }
  0x31   :  { %v2695_v3 = vor.u32 %v3323_v1, %v2694_v0  ;;  %v2696_v4 = vld [vmem:[%s4526_s28 + $0x78] sm:$0xf0]  ;;  %v2686_v5 = vld [vmem:[%s4526_s28 + $0x60] sm:$0xf]  ;;  %v3321_v6 = vld [vmem:[%s4526_s28 + $0x64] sm:$0xf0] }
  0x32   :  { %v2699_v7 = vor.u32 %v3322_v2, %v2696_v4  ;;  %v3320_v8 = vld [vmem:[%s4526_s28 + $0x64] sm:$0xf]  ;;  %v2688_v9 = vld [vmem:[%s4526_s28 + $0x68] sm:$0xf0]  ;;  %v2687_v10 = vor.u32 %v3321_v6, %v2686_v5  ;;  %v2678_v12 = vld [vmem:[%s4526_s28 + $0x50] sm:$0xf] }
  0x33   :  { %303 = vmatpush.bf16.msra.mxu0 %v2695_v3  ;;  %v2691_v11 = vor.u32 %v3320_v8, %v2688_v9  ;;  %v3319_v13 = vld [vmem:[%s4526_s28 + $0x54] sm:$0xf0]  ;;  %v3318_v14 = vld [vmem:[%s4526_s28 + $0x54] sm:$0xf]  ;;  %v2680_v15 = vld [vmem:[%s4526_s28 + $0x58] sm:$0xf0] }
  0x34   :  { %317 = vmatpush.bf16.msra.mxu1 %v2699_v7  ;;  %v2679_v16 = vor.u32 %v3319_v13, %v2678_v12  ;;  %v2683_v17 = vor.u32 %v3318_v14, %v2680_v15  ;;  %v2670_v18 = vld [vmem:[%s4526_s28 + $0x40] sm:$0xf]  ;;  %v3317_v19 = vld [vmem:[%s4526_s28 + $0x44] sm:$0xf0]  ;;  %v3316_v20 = vld [vmem:[%s4526_s28 + $0x44] sm:$0xf] }
  0x35   :  { %v2672_v21 = vld [vmem:[%s4526_s28 + $0x48] sm:$0xf0]  ;;  %v2671_v22 = vor.u32 %v3317_v19, %v2670_v18  ;;  %v2662_v24 = vld [vmem:[%s4526_s28 + $0x30] sm:$0xf]  ;;  %v3315_v25 = vld [vmem:[%s4526_s28 + $0x34] sm:$0xf0] }
  0x36   :  { %v2675_v23 = vor.u32 %v3316_v20, %v2672_v21  ;;  %v3314_v26 = vld [vmem:[%s4526_s28 + $0x34] sm:$0xf]  ;;  %v2664_v27 = vld [vmem:[%s4526_s28 + $0x38] sm:$0xf0]  ;;  %v2663_v28 = vor.u32 %v3315_v25, %v2662_v24  ;;  %v2654_v30 = vld [vmem:[%s4526_s28 + $0x20] sm:$0xf] }
  0x37   :  { %304 = vmatpush.bf16.msra.mxu0 %v2687_v10  ;;  %v2667_v29 = vor.u32 %v3314_v26, %v2664_v27  ;;  %v3313_v31 = vld [vmem:[%s4526_s28 + $0x24] sm:$0xf0]  ;;  %v3312_v32 = vld [vmem:[%s4526_s28 + $0x24] sm:$0xf]  ;;  %v2656_v33 = vld [vmem:[%s4526_s28 + $0x28] sm:$0xf0] }
  0x38   :  { %318 = vmatpush.bf16.msra.mxu1 %v2691_v11  ;;  %v2655_v34 = vor.u32 %v3313_v31, %v2654_v30  ;;  %v2659_v35 = vor.u32 %v3312_v32, %v2656_v33  ;;  %v2646_v36 = vld [vmem:[%s4526_s28 + $0x10] sm:$0xf]  ;;  %v3311_v37 = vld [vmem:[%s4526_s28 + $0x14] sm:$0xf0]  ;;  %v3310_v38 = vld [vmem:[%s4526_s28 + $0x14] sm:$0xf] }
  0x39   :  { %v2648_v39 = vld [vmem:[%s4526_s28 + $0x18] sm:$0xf0]  ;;  %v2647_v40 = vor.u32 %v3311_v37, %v2646_v36  ;;  %v2638_v42 = vld [vmem:[%s4526_s28] sm:$0xf]  ;;  %v3309_v43 = vld [vmem:[%s4526_s28 + $0x4] sm:$0xf0] }
  0x3a   :  { %v2651_v41 = vor.u32 %v3310_v38, %v2648_v39  ;;  %v3308_v44 = vld [vmem:[%s4526_s28 + $0x4] sm:$0xf]  ;;  %v2640_v45 = vld [vmem:[%s4526_s28 + $0x8] sm:$0xf0]  ;;  %v2639_v46 = vor.u32 %v3309_v43, %v2638_v42  ;;  %v4026_v0 = vsel %vm197_vm0, 1.0, %v3780_v63 }
  0x3b   :  { %305 = vmatpush.bf16.msra.mxu0 %v2679_v16  ;;  %v2643_v49 = vor.u32 %v3308_v44, %v2640_v45  ;;  %v2762_v6 = vld [vmem:[#allocation8 + $0x70] sm:$0xf]  ;;  %v3339_v7 = vld [vmem:[#allocation8 + $0x74] sm:$0xf0]  ;;  %v3338_v11 = vld [vmem:[#allocation8 + $0x74] sm:$0xf] }
  0x3c   :  { %319 = vmatpush.bf16.msra.mxu1 %v2683_v17  ;;  %v2826_v8 = vld [vmem:[#allocation8 + $0xf0] sm:$0xf]  ;;  %v2763_v9 = vor.u32 %v3339_v7, %v2762_v6  ;;  %v3355_v10 = vld [vmem:[#allocation8 + $0xf4] sm:$0xf0]  ;;  %v2764_v12 = vld [vmem:[#allocation8 + $0x78] sm:$0xf0] }
  0x3d   :  { %v2827_v13 = vor.u32 %v3355_v10, %v2826_v8  ;;  %v2767_v14 = vor.u32 %v3338_v11, %v2764_v12  ;;  %v3354_v15 = vld [vmem:[#allocation8 + $0xf4] sm:$0xf]  ;;  %v2828_v16 = vld [vmem:[#allocation8 + $0xf8] sm:$0xf0]  ;;  %v2754_v18 = vld [vmem:[#allocation8 + $0x60] sm:$0xf] }
  0x3e   :  { %v2831_v17 = vor.u32 %v3354_v15, %v2828_v16  ;;  %v3337_v19 = vld [vmem:[#allocation8 + $0x64] sm:$0xf0]  ;;  %v2818_v20 = vld [vmem:[#allocation8 + $0xe0] sm:$0xf]  ;;  %v2756_v24 = vld [vmem:[#allocation8 + $0x68] sm:$0xf0] }
  0x3f   :  { %306 = vmatpush.bf16.msra.mxu0 %v2671_v22  ;;  %v2755_v21 = vor.u32 %v3337_v19, %v2754_v18  ;;  %v3353_v22 = vld [vmem:[#allocation8 + $0xe4] sm:$0xf0]  ;;  %v3352_v27 = vld [vmem:[#allocation8 + $0xe4] sm:$0xf]  ;;  %v2746_v32 = vld [vmem:[#allocation8 + $0x50] sm:$0xf] }
  0x40   :  { %320 = vmatpush.bf16.msra.mxu1 %v2675_v23  ;;  %v3336_v23 = vld [vmem:[#allocation8 + $0x64] sm:$0xf]  ;;  %v2819_v25 = vor.u32 %v3353_v22, %v2818_v20  ;;  %v3335_v33 = vld [vmem:[#allocation8 + $0x54] sm:$0xf0]  ;;  %v3334_v38 = vld [vmem:[#allocation8 + $0x54] sm:$0xf] }
  0x41   :  { %v2759_v26 = vor.u32 %v3336_v23, %v2756_v24  ;;  %v3351_v36 = vld [vmem:[#allocation8 + $0xd4] sm:$0xf0]  ;;  %v2748_v39 = vld [vmem:[#allocation8 + $0x58] sm:$0xf0]  ;;  %v3330_v10 = vld [vmem:[#allocation8 + $0x34] sm:$0xf] }
  0x42   :  { %v2751_v43 = vor.u32 %v3334_v38, %v2748_v39  ;;  %v2812_v44 = vld [vmem:[#allocation8 + $0xd8] sm:$0xf0]  ;;  %v3346_v15 = vld [vmem:[#allocation8 + $0xb4] sm:$0xf]  ;;  %v2722_v19 = vld [vmem:[#allocation8 + $0x20] sm:$0xf] }
  0x43   :  { %307 = vmatpush.bf16.msra.mxu0 %v2663_v28  ;;  %v2820_v28 = vld [vmem:[#allocation8 + $0xe8] sm:$0xf0]  ;;  %v2732_v11 = vld [vmem:[#allocation8 + $0x38] sm:$0xf0]  ;;  %v3329_v20 = vld [vmem:[#allocation8 + $0x24] sm:$0xf0] }
  0x44   :  { %321 = vmatpush.bf16.msra.mxu1 %v2667_v29  ;;  %v2823_v30 = vor.u32 %v3352_v27, %v2820_v28  ;;  %v2796_v16 = vld [vmem:[#allocation8 + $0xb8] sm:$0xf0]  ;;  %v2723_v23 = vor.u32 %v3329_v20, %v2722_v19  ;;  %v3345_v24 = vld [vmem:[#allocation8 + $0xa4] sm:$0xf0]  ;;  %v3326_v38 = vld [vmem:[#allocation8 + $0x14] sm:$0xf] }
  0x45   :  { %v2799_v18 = vor.u32 %v3346_v15, %v2796_v16  ;;  %v331_v15 = vld [vmem:[#allocation7] sm:$0x3] }
  0x47   :  { %308 = vmatpush.bf16.msra.mxu0 %v2655_v34  ;;  %v2747_v34 = vor.u32 %v3335_v33, %v2746_v32  ;;  %v2714_v33 = vld [vmem:[#allocation8 + $0x10] sm:$0xf] }
  0x48   :  { %322 = vmatpush.bf16.msra.mxu1 %v2659_v35  ;;  %v2810_v35 = vld [vmem:[#allocation8 + $0xd0] sm:$0xf] }
  0x49   :  { %v2811_v37 = vor.u32 %v3351_v36, %v2810_v35  ;;  %v2778_v36 = vld [vmem:[#allocation8 + $0x90] sm:$0xf] }
  0x4b   :  { %309 = vmatpush.bf16.msra.mxu0 %v2647_v40  ;;  %v3350_v40 = vld [vmem:[#allocation8 + $0xd4] sm:$0xf] }
  0x4c   :  { %323 = vmatpush.bf16.msra.mxu1 %v2651_v41  ;;  %v2815_v45 = vor.u32 %v3350_v40, %v2812_v44  ;;  %v2716_v40 = vld [vmem:[#allocation8 + $0x18] sm:$0xf0] }
  0x4d   :  { %v2780_v44 = vld [vmem:[#allocation8 + $0x98] sm:$0xf0] }
  0x4f   :  { %310 = vmatpush.bf16.msra.mxu0 %v2639_v46  ;;  %v2738_v46 = vld [vmem:[#allocation8 + $0x40] sm:$0xf] }
  0x50   :  { %324 = vmatpush.bf16.msra.mxu1 %v2643_v49  ;;  %v2739_v49 = vor.u32 %v3333_v47, %v2738_v46  ;;  %v2706_v46 = vld [vmem:[#allocation8] sm:$0xf]  ;;  %v3325_v47 = vld [vmem:[#allocation8 + $0x4] sm:$0xf0] }
  0x52   :  { %311 = vmatmul.bf16.vlgmr.msra.gmra.mxu0 %v200_v50 }
  0x53   :  { %325 = vmatmul.bf16.vlgmr.msra.gmra.mxu1 %v200_v50  ;;  %720 = vmatpush.bf16.msrb.mxu0 %v2767_v14  ;;  %v3349_v50 = vld [vmem:[#allocation8 + $0xc4] sm:$0xf0]  ;;  %v2735_v14 = vor.u32 %v3330_v10, %v2732_v11 }
  0x54   :  { %734 = vmatpush.bf16.msrb.mxu1 %v2831_v17 }
  0x57   :  { %721 = vmatpush.bf16.msrb.mxu0 %v2759_v26  ;;  %v2724_v26 = vld [vmem:[#allocation8 + $0x28] sm:$0xf0] }
  0x58   :  { %735 = vmatpush.bf16.msrb.mxu1 %v2823_v30  ;;  %v2788_v30 = vld [vmem:[#allocation8 + $0xa8] sm:$0xf0] }
  0x5b   :  { %722 = vmatpush.bf16.msrb.mxu0 %v2751_v43  ;;  %v3342_v43 = vld [vmem:[#allocation8 + $0x94] sm:$0xf] }
  0x5c   :  { %736 = vmatpush.bf16.msrb.mxu1 %v2815_v45 }
  0xcf   :  { %v312_v51 = vpop.f32.mrf.mxu0 }
  0xd0   :  { %v326_v53 = vpop.f32.mrf.mxu1  ;;  %v4023_v62 = vadd.f32 %v312_v51, %v219_v56  ;;  %v3332_v51 = vld [vmem:[#allocation8 + $0x44] sm:$0xf] }
  0xd1   :  { %v4030_v2 = vadd.f32 %v326_v53, %v220_v57  ;;  %v2803_v53 = vor.u32 %v3349_v50, %v2802_v48  ;;  %v2743_v55 = vor.u32 %v3332_v51, %v2740_v52  ;;  %v2719_v48 = vor.u32 %v3326_v38, %v2716_v40  ;;  %v3341_v50 = vld [vmem:[#allocation8 + $0x84] sm:$0xf0]  ;;  %v3324_v52 = vld [vmem:[#allocation8 + $0x4] sm:$0xf] }
  0xd2   :  { %v379_v4 = vmul.f32 %v4023_v62, %v4023_v62  ;;  %v2783_v51 = vor.u32 %v3342_v43, %v2780_v44 }
  0xd3   :  { %v380_v5 = vmul.f32 %v4030_v2, %v4030_v2  ;;  %723 = vmatpush.bf16.msrb.mxu0 %v2743_v55  ;;  %v2707_v55 = vor.u32 %v3325_v47, %v2706_v46  ;;  %v526_v46 = vld [vmem:[#allocation10] sm:$0x3] }
  0xd4   :  { %v529_v47 = vperm.slane %v526_v46, 1 }
  0xd7   :  { %v314_v58 = vpop.f32.mrf.mxu0  ;;  %724 = vmatpush.bf16.msrb.mxu0 %v2735_v14 }
  0xd8   :  { %v4019_v59 = vadd.f32 %v314_v58, %v219_v56  ;;  %v328_v60 = vpop.f32.mrf.mxu1  ;;  %v3348_v56 = vld [vmem:[#allocation8 + $0xc4] sm:$0xf]  ;;  %v2730_v58 = vld [vmem:[#allocation8 + $0x30] sm:$0xf] }
  0xd9   :  { %v4021_v61 = vadd.f32 %v328_v60, %v220_v57  ;;  %v2804_v57 = vld [vmem:[#allocation8 + $0xc8] sm:$0xf0] }
  0xda   :  { %351 = vmatpush.msra.mxu2 %v4019_v59  ;;  %v381_v1 = vmul.f32 %v4019_v59, %v4019_v59  ;;  %v2807_v63 = vor.u32 %v3348_v56, %v2804_v57  ;;  %v3340_v56 = vld [vmem:[#allocation8 + $0x84] sm:$0xf]  ;;  %v2772_v57 = vld [vmem:[#allocation8 + $0x88] sm:$0xf0] }
  0xdb   :  { %371 = vmatpush.msra.mxu3 %v4021_v61  ;;  %v382_v3 = vmul.f32 %v4021_v61, %v4021_v61 }
  0xdc   :  { %352 = vmatpush.msra.mxu2 %v4023_v62  ;;  %737 = vmatpush.bf16.msrb.mxu1 %v2807_v63 }
  0xdd   :  { %372 = vmatpush.msra.mxu3 %v4030_v2  ;;  %2700 = vmatmul.msk.f32.vlgmr.msra.gmra.mxu2 %vm333_vm1, %v4026_v0 }
  0xde   :  { %2701 = vmatmul.msk.f32.vlgmr.msra.gmra.mxu3 %vm333_vm1, %v4026_v0  ;;  %397 = vmatpush.msrb.mxu2 %v381_v1  ;;  %v3331_v1 = vld [vmem:[#allocation8 + $0x34] sm:$0xf0] }
  0xdf   :  { %417 = vmatpush.msrb.mxu3 %v382_v3  ;;  %v2794_v3 = vld [vmem:[#allocation8 + $0xb0] sm:$0xf]  ;;  %v2731_v8 = vor.u32 %v3331_v1, %v2730_v58 }
  0xe0   :  { %398 = vmatpush.msrb.mxu2 %v379_v4  ;;  %v3347_v4 = vld [vmem:[#allocation8 + $0xb4] sm:$0xf0]  ;;  %738 = vmatpush.bf16.msrb.mxu1 %v2799_v18 }
  0xe1   :  { %418 = vmatpush.msrb.mxu3 %v380_v5 }
  0xe2   :  { %692 = vmatpush.bf16.msra.mxu2 %v2763_v9  ;;  %v2795_v9 = vor.u32 %v3347_v4, %v2794_v3 }
  0xe3   :  { %706 = vmatpush.bf16.msra.mxu3 %v2827_v13 }
  0xe5   :  { %2702 = vmatmul.msk.f32.vlgmr.msrb.gmra.mxu2 %vm333_vm1, %v4026_v0 }
  0xe6   :  { %2703 = vmatmul.msk.f32.vlgmr.msrb.gmra.mxu3 %vm333_vm1, %v4026_v0  ;;  %693 = vmatpush.bf16.msra.mxu2 %v2755_v21  ;;  %v2786_v21 = vld [vmem:[#allocation8 + $0xa0] sm:$0xf] }
  0xe7   :  { %707 = vmatpush.bf16.msra.mxu3 %v2819_v25  ;;  %v3328_v25 = vld [vmem:[#allocation8 + $0x24] sm:$0xf]  ;;  %v2787_v28 = vor.u32 %v3345_v24, %v2786_v21 }
  0xe8   :  { %v2727_v32 = vor.u32 %v3328_v25, %v2724_v26 }
  0xea   :  { %694 = vmatpush.bf16.msra.mxu2 %v2747_v34  ;;  %v3327_v34 = vld [vmem:[#allocation8 + $0x14] sm:$0xf0]  ;;  %725 = vmatpush.bf16.msrb.mxu0 %v2727_v32 }
  0xeb   :  { %708 = vmatpush.bf16.msra.mxu3 %v2811_v37  ;;  %v3343_v37 = vld [vmem:[#allocation8 + $0x94] sm:$0xf0]  ;;  %v2715_v39 = vor.u32 %v3327_v34, %v2714_v33 }
  0xec   :  { %v2779_v45 = vor.u32 %v3343_v37, %v2778_v36 }
  0xee   :  { %695 = vmatpush.bf16.msra.mxu2 %v2739_v49  ;;  %v2770_v49 = vld [vmem:[#allocation8 + $0x80] sm:$0xf]  ;;  %726 = vmatpush.bf16.msrb.mxu0 %v2719_v48 }
  0xef   :  { %709 = vmatpush.bf16.msra.mxu3 %v2803_v53  ;;  %v2708_v53 = vld [vmem:[#allocation8 + $0x8] sm:$0xf0] }
  0xf0   :  { %v2711_v3 = vor.u32 %v3324_v52, %v2708_v53 }
  0xf2   :  { %696 = vmatpush.bf16.msra.mxu2 %v2731_v8  ;;  %727 = vmatpush.bf16.msrb.mxu0 %v2711_v3 }
  0xf3   :  { %710 = vmatpush.bf16.msra.mxu3 %v2795_v9 }
  0xf6   :  { %697 = vmatpush.bf16.msra.mxu2 %v2723_v23  ;;  %v332_v23 = vld [vmem:[%s4508_s4] sm:$0x3] }
  0xf7   :  { %711 = vmatpush.bf16.msra.mxu3 %v2787_v28 }
  0xfa   :  { %698 = vmatpush.bf16.msra.mxu2 %v2715_v39 }
  0xfb   :  { %712 = vmatpush.bf16.msra.mxu3 %v2779_v45 }
  0xfe   :  { %699 = vmatpush.bf16.msra.mxu2 %v2707_v55  ;;  %v528_v55 = vperm.slane %v526_v46, 0  ;;  %v3365_v46 = vld [vmem:[#allocation8 + $0x144] sm:$0xf0] }
 0x160   :  { %v354_v29 = vpop.f32.mrf.mxu2 }
 0x161   :  { %v374_v31 = vpop.f32.mrf.mxu3  ;;  %v4049_v41 = vmul.f32 0.0625, %v354_v29  ;;  %v3344_v29 = vld [vmem:[#allocation8 + $0xa4] sm:$0xf] }
 0x162   :  { %v4051_v42 = vmul.f32 0.0625, %v374_v31  ;;  %v2791_v35 = vor.u32 %v3344_v29, %v2788_v30 }
 0x163   :  { %v425_v5 = vmul.f32 %v4049_v41, %v4049_v41 }
 0x164   :  { %v426_v12 = vmul.f32 %v4051_v42, %v4051_v42  ;;  %739 = vmatpush.bf16.msrb.mxu1 %v2791_v35 }
 0x168   :  { %v400_v60 = vpop.f32.mrf.mxu2  ;;  %740 = vmatpush.bf16.msrb.mxu1 %v2783_v51 }
 0x169   :  { %v423_v6 = vmul.f32 0.0625, %v400_v60  ;;  %v420_v7 = vpop.f32.mrf.mxu3  ;;  %v2771_v60 = vor.u32 %v3341_v50, %v2770_v49 }
 0x16a   :  { %v424_v13 = vmul.f32 0.0625, %v420_v7 }
 0x16b   :  { %v427_v17 = vsub.f32 %v423_v6, %v425_v5  ;;  %v2775_v5 = vor.u32 %v3340_v56, %v2772_v57  ;;  %713 = vmatpush.bf16.msra.mxu3 %v2771_v60 }
 0x16c   :  { %v428_v22 = vsub.f32 %v424_v13, %v426_v12 }
 0x16d   :  { %v4057_v27 = vadd.f32 1e-05, %v427_v17  ;;  %741 = vmatpush.bf16.msrb.mxu1 %v2775_v5 }
 0x16e   :  { %v430_v31 = vadd.f32 1e-05, %v428_v22 }
 0x16f   :  { %3485 = vrsqrt.f32 %v4057_v27  ;;  %vm437_vm6 = vweird.f32 %v4057_v27 }
 0x170   :  { %3487 = vrsqrt.f32 %v430_v31  ;;  %vm447_vm4 = vweird.f32 %v430_v31 }
 0x175   :  { %v3486_v58 = vpop.eup %3485 }
 0x176   :  { %v3488_v63 = vpop.eup %3487  ;;  %v432_v1 = vmul.f32 %v3486_v58, %v4057_v27  ;;  %vm438_vm3 = vweird.f32 %v3486_v58 }
 0x177   :  { %v442_v4 = vmul.f32 %v3488_v63, %v430_v31  ;;  %vm448_vm2 = vweird.f32 %v3488_v63  ;;  %vm439_vm8 = vmor %vm437_vm6, %vm438_vm3 }
 0x178   :  { %v433_v6 = vmul.f32 %v3486_v58, %v432_v1  ;;  %vm449_vm5 = vmor %vm447_vm4, %vm448_vm2 }
 0x179   :  { %v443_v7 = vmul.f32 %v3488_v63, %v442_v4 }
 0x17a   :  { %v434_v8 = vmul.f32 0.5, %v433_v6 }
 0x17b   :  { %v444_v9 = vmul.f32 0.5, %v443_v7 }
 0x17c   :  { %v435_v10 = vsub.f32 1.5, %v434_v8 }
 0x17d   :  { %v445_v11 = vsub.f32 1.5, %v444_v9  ;;  %v2894_v9 = vld [vmem:[#allocation8 + $0x170] sm:$0xf] }
 0x17e   :  { %v436_v12 = vmul.f32 %v3486_v58, %v435_v10  ;;  %v3371_v10 = vld [vmem:[#allocation8 + $0x174] sm:$0xf0] }
 0x17f   :  { %v446_v13 = vmul.f32 %v3488_v63, %v445_v11  ;;  %v2958_v11 = vld [vmem:[#allocation8 + $0x1f0] sm:$0xf] }
 0x180   :  { %v440_v17 = vsel %vm439_vm8, %v3486_v58, %v436_v12  ;;  %v2895_v12 = vor.u32 %v3371_v10, %v2894_v9  ;;  %v2926_v9 = vld [vmem:[#allocation8 + $0x1b0] sm:$0xf] }
 0x181   :  { %v450_v14 = vsel %vm449_vm5, %v3488_v63, %v446_v13  ;;  %v3387_v13 = vld [vmem:[#allocation8 + $0x1f4] sm:$0xf0] }
 0x182   :  { %v453_v16 = vrot.slane %v450_v14, 7  ;;  %v3370_v14 = vld [vmem:[#allocation8 + $0x174] sm:$0xf]  ;;  %1106 = vmatpush.bf16.msra.mxu0 %v2895_v12  ;;  %v3379_v12 = vld [vmem:[#allocation8 + $0x1b4] sm:$0xf0] }
 0x184   :  { %v455_v18 = vsel %vm454_vm7, %v440_v17, %v453_v16  ;;  %v2959_v16 = vor.u32 %v3387_v13, %v2958_v11  ;;  %v3362_v13 = vld [vmem:[#allocation8 + $0x134] sm:$0xf] }
 0x185   :  { %v457_v19 = vmul.f32 %v455_v18, %v331_v15  ;;  %v2896_v15 = vld [vmem:[#allocation8 + $0x178] sm:$0xf0]  ;;  %v3386_v18 = vld [vmem:[#allocation8 + $0x1f4] sm:$0xf] }
 0x186   :  { %v2899_v17 = vor.u32 %v3370_v14, %v2896_v15  ;;  %1120 = vmatpush.bf16.msra.mxu1 %v2959_v16  ;;  %v2927_v15 = vor.u32 %v3379_v12, %v2926_v9  ;;  %v2864_v16 = vld [vmem:[#allocation8 + $0x138] sm:$0xf0] }
 0x187   :  { %v460_v20 = vperm.slane %v457_v19, 1  ;;  %v459_v21 = vperm.slane %v457_v19, 0  ;;  %v2960_v19 = vld [vmem:[#allocation8 + $0x1f8] sm:$0xf0] }
 0x189   :  { %v464_v22 = vmul.f32 %v460_v20, %v4051_v42  ;;  %v463_v24 = vmul.f32 %v459_v21, %v4049_v41  ;;  %v471_v28 = vmul.f32 %v459_v21, %v4023_v62  ;;  %v473_v29 = vmul.f32 %v459_v21, %v4019_v59 }
 0x18a   :  { %v472_v31 = vmul.f32 %v460_v20, %v4030_v2  ;;  %v474_v32 = vmul.f32 %v460_v20, %v4021_v61  ;;  %v2963_v20 = vor.u32 %v3386_v18, %v2960_v19  ;;  %v2928_v18 = vld [vmem:[#allocation8 + $0x1b8] sm:$0xf0] }
 0x18b   :  { %v467_v25 = vrot.slane %v464_v22, 7  ;;  %v2886_v22 = vld [vmem:[#allocation8 + $0x160] sm:$0xf] }
 0x18d   :  { %v468_v26 = vsel %vm454_vm7, %v463_v24, %v467_v25  ;;  %v2950_v24 = vld [vmem:[#allocation8 + $0x1e0] sm:$0xf] }
 0x18e   :  { %v470_v27 = vsub.f32 %v332_v23, %v468_v26  ;;  %v3369_v23 = vld [vmem:[#allocation8 + $0x164] sm:$0xf0] }
 0x18f   :  { %v2887_v25 = vor.u32 %v3369_v23, %v2886_v22  ;;  %v3385_v26 = vld [vmem:[#allocation8 + $0x1e4] sm:$0xf0]  ;;  %v2854_v22 = vld [vmem:[#allocation8 + $0x120] sm:$0xf] }
 0x190   :  { %v476_v30 = vperm.slane %v470_v27, 0  ;;  %v477_v42 = vperm.slane %v470_v27, 1  ;;  %v2951_v27 = vor.u32 %v3385_v26, %v2950_v24  ;;  %v3361_v23 = vld [vmem:[#allocation8 + $0x124] sm:$0xf0]  ;;  %v2918_v26 = vld [vmem:[#allocation8 + $0x1a0] sm:$0xf] }
 0x191   :  { %1107 = vmatpush.bf16.msra.mxu0 %v2887_v25  ;;  %v2855_v25 = vor.u32 %v3361_v23, %v2854_v22 }
 0x192   :  { %v480_v33 = vadd.f32 %v476_v30, %v471_v28  ;;  %v482_v34 = vadd.f32 %v476_v30, %v473_v29  ;;  %v481_v35 = vadd.f32 %v477_v42, %v472_v31  ;;  %v483_v36 = vadd.f32 %v477_v42, %v474_v32  ;;  %v3368_v28 = vld [vmem:[#allocation8 + $0x164] sm:$0xf]  ;;  %v2888_v29 = vld [vmem:[#allocation8 + $0x168] sm:$0xf0]  ;;  %1121 = vmatpush.bf16.msra.mxu1 %v2951_v27  ;;  %v3377_v27 = vld [vmem:[#allocation8 + $0x1a4] sm:$0xf0] }
 0x193   :  { %v3384_v30 = vld [vmem:[#allocation8 + $0x1e4] sm:$0xf]  ;;  %v2891_v32 = vor.u32 %v3368_v28, %v2888_v29  ;;  %v2952_v42 = vld [vmem:[#allocation8 + $0x1e8] sm:$0xf0] }
 0x194   :  { %v484_v37 = vmul.f32 0.01, %v480_v33  ;;  %v486_v41 = vmul.f32 0.01, %v482_v34  ;;  %v485_v38 = vmul.f32 0.01, %v481_v35 }
 0x195   :  { %v487_v39 = vmul.f32 0.01, %v483_v36  ;;  %v3360_v28 = vld [vmem:[#allocation8 + $0x124] sm:$0xf] }
 0x196   :  { %v488_v40 = vmax.f32 %v480_v33, %v484_v37  ;;  %v490_v43 = vmax.f32 %v482_v34, %v486_v41  ;;  %v489_v44 = vmax.f32 %v481_v35, %v485_v38  ;;  %v2955_v33 = vor.u32 %v3384_v30, %v2952_v42  ;;  %v2878_v34 = vld [vmem:[#allocation8 + $0x150] sm:$0xf]  ;;  %v3367_v35 = vld [vmem:[#allocation8 + $0x154] sm:$0xf0]  ;;  %v3366_v38 = vld [vmem:[#allocation8 + $0x154] sm:$0xf] }
 0x197   :  { %v491_v62 = vmax.f32 %v483_v36, %v487_v39  ;;  %v2942_v36 = vld [vmem:[#allocation8 + $0x1d0] sm:$0xf]  ;;  %v2879_v37 = vor.u32 %v3367_v35, %v2878_v34  ;;  %v3383_v41 = vld [vmem:[#allocation8 + $0x1d4] sm:$0xf0]  ;;  %v2880_v39 = vld [vmem:[#allocation8 + $0x158] sm:$0xf0]  ;;  %v2919_v30 = vor.u32 %v3377_v27, %v2918_v26 }
 0x198   :  { %v492_v45 = vpack.c.bf16 %v490_v43, %v488_v40  ;;  %v2943_v43 = vor.u32 %v3383_v41, %v2942_v36  ;;  %v3376_v42 = vld [vmem:[#allocation8 + $0x1a4] sm:$0xf]  ;;  %v2846_v36 = vld [vmem:[#allocation8 + $0x110] sm:$0xf] }
 0x199   :  { %v493_v59 = vpack.c.bf16 %v491_v62, %v489_v44  ;;  %v2883_v44 = vor.u32 %v3366_v38, %v2880_v39  ;;  %v3382_v62 = vld [vmem:[#allocation8 + $0x1d4] sm:$0xf]  ;;  %1108 = vmatpush.bf16.msra.mxu0 %v2879_v37  ;;  %v3359_v37 = vld [vmem:[#allocation8 + $0x114] sm:$0xf0]  ;;  %v2910_v41 = vld [vmem:[#allocation8 + $0x190] sm:$0xf] }
 0x19a   :  { %700 = vmatmul.bf16.vlgmr.msra.gmra.mxu2 %v492_v45  ;;  %728 = vmatmul.bf16.vlgmr.msrb.gmra.mxu0 %v492_v45  ;;  %v2944_v45 = vld [vmem:[#allocation8 + $0x1d8] sm:$0xf0]  ;;  %v2847_v39 = vor.u32 %v3359_v37, %v2846_v36  ;;  %v749_v27 = vld [vmem:[#allocation13] sm:$0x3] }
 0x19b   :  { %714 = vmatmul.bf16.vlgmr.msra.gmra.mxu3 %v493_v59  ;;  %742 = vmatmul.bf16.vlgmr.msrb.gmra.mxu1 %v493_v59  ;;  %v2947_v59 = vor.u32 %v3382_v62, %v2944_v45  ;;  %v2848_v62 = vld [vmem:[#allocation8 + $0x118] sm:$0xf0]  ;;  %v3374_v45 = vld [vmem:[#allocation8 + $0x194] sm:$0xf] }
 0x19c   :  { %1122 = vmatpush.bf16.msra.mxu1 %v2943_v43  ;;  %v3358_v43 = vld [vmem:[#allocation8 + $0x114] sm:$0xf] }
 0x217   :  { %v729_v61 = vpop.f32.mrf.mxu0 }
 0x218   :  { %v743_v2 = vpop.f32.mrf.mxu1  ;;  %v730_v51 = vadd.f32 %v729_v61, %v529_v47 }
 0x21a   :  { %v4075_v57 = vadd.f32 %v743_v2, %v730_v51  ;;  %v2870_v2 = vld [vmem:[#allocation8 + $0x140] sm:$0xf]  ;;  %v3381_v51 = vld [vmem:[#allocation8 + $0x1c4] sm:$0xf0] }
 0x21c   :  { %v793_v5 = vmul.f32 %v4075_v57, %v4075_v57 }
 0x21d   :  { %v701_v48 = vpop.f32.mrf.mxu2 }
 0x21e   :  { %v715_v49 = vpop.f32.mrf.mxu3  ;;  %v702_v63 = vadd.f32 %v701_v48, %v528_v55 }
 0x21f   :  { %v731_v50 = vpop.f32.mrf.mxu0 }
 0x220   :  { %v732_v52 = vadd.f32 %v731_v50, %v529_v47  ;;  %v745_v53 = vpop.f32.mrf.mxu1  ;;  %v4087_v6 = vadd.f32 %v715_v49, %v702_v63  ;;  %v2934_v47 = vld [vmem:[#allocation8 + $0x1c0] sm:$0xf]  ;;  %v2871_v50 = vor.u32 %v3365_v46, %v2870_v2  ;;  %v2851_v2 = vor.u32 %v3358_v43, %v2848_v62 }
 0x221   :  { %v2838_v46 = vld [vmem:[#allocation8 + $0x100] sm:$0xf] }
 0x222   :  { %v4073_v56 = vadd.f32 %v745_v53, %v732_v52  ;;  %v792_v8 = vmul.f32 %v4087_v6, %v4087_v6  ;;  %v3364_v52 = vld [vmem:[#allocation8 + $0x144] sm:$0xf]  ;;  %v2935_v53 = vor.u32 %v3381_v51, %v2934_v47  ;;  %1109 = vmatpush.bf16.msra.mxu0 %v2871_v50  ;;  %v3357_v47 = vld [vmem:[#allocation8 + $0x104] sm:$0xf0] }
 0x223   :  { %v3373_v51 = vld [vmem:[#allocation8 + $0x184] sm:$0xf0] }
 0x224   :  { %v795_v58 = vmul.f32 %v4073_v56, %v4073_v56  ;;  %784 = vmatpush.msrb.mxu3 %v4073_v56  ;;  %1123 = vmatpush.bf16.msra.mxu1 %v2935_v53  ;;  %v2840_v53 = vld [vmem:[#allocation8 + $0x108] sm:$0xf0] }
 0x225   :  { %v703_v60 = vpop.f32.mrf.mxu2 }
 0x226   :  { %v704_v1 = vadd.f32 %v703_v60, %v528_v55  ;;  %785 = vmatpush.msrb.mxu3 %v4075_v57  ;;  %v717_v3 = vpop.f32.mrf.mxu3  ;;  %v2872_v55 = vld [vmem:[#allocation8 + $0x148] sm:$0xf0] }
 0x227   :  { %2833 = vmatmul.msk.f32.vlgmr.msrb.gmra.mxu3 %vm333_vm1, %v4026_v0  ;;  %v2936_v60 = vld [vmem:[#allocation8 + $0x1c8] sm:$0xf0] }
 0x228   :  { %v4083_v4 = vadd.f32 %v717_v3, %v704_v1  ;;  %830 = vmatpush.msra.mxu3 %v795_v58  ;;  %v3380_v58 = vld [vmem:[#allocation8 + $0x1c4] sm:$0xf]  ;;  %v2875_v3 = vor.u32 %v3364_v52, %v2872_v55  ;;  %1124 = vmatpush.bf16.msra.mxu1 %v2927_v15  ;;  %v2839_v55 = vor.u32 %v3357_v47, %v2838_v46 }
 0x229   :  { %v3356_v52 = vld [vmem:[#allocation8 + $0x104] sm:$0xf] }
 0x22a   :  { %v794_v7 = vmul.f32 %v4083_v4, %v4083_v4  ;;  %831 = vmatpush.msra.mxu3 %v793_v5  ;;  %764 = vmatpush.msrb.mxu2 %v4083_v4  ;;  %v2939_v5 = vor.u32 %v3380_v58, %v2936_v60  ;;  %v3372_v58 = vld [vmem:[#allocation8 + $0x184] sm:$0xf]  ;;  %v2904_v60 = vld [vmem:[#allocation8 + $0x188] sm:$0xf0] }
 0x22c   :  { %765 = vmatpush.msrb.mxu2 %v4087_v6  ;;  %1148 = vmatpush.bf16.msrb.mxu3 %v2963_v20 }
 0x22d   :  { %2832 = vmatmul.msk.f32.vlgmr.msrb.gmra.mxu2 %vm333_vm1, %v4026_v0  ;;  %1125 = vmatpush.bf16.msra.mxu1 %v2919_v30 }
 0x22e   :  { %810 = vmatpush.msra.mxu2 %v794_v7  ;;  %v2862_v7 = vld [vmem:[#allocation8 + $0x130] sm:$0xf] }
 0x22f   :  { %2835 = vmatmul.msk.f32.vlgmr.msra.gmra.mxu3 %vm333_vm1, %v4026_v0 }
 0x230   :  { %811 = vmatpush.msra.mxu2 %v792_v8  ;;  %1149 = vmatpush.bf16.msrb.mxu3 %v2955_v33  ;;  %v3363_v8 = vld [vmem:[#allocation8 + $0x134] sm:$0xf0]  ;;  %v2920_v33 = vld [vmem:[#allocation8 + $0x1a8] sm:$0xf0] }
 0x231   :  { %v2863_v11 = vor.u32 %v3363_v8, %v2862_v7  ;;  %v2923_v35 = vor.u32 %v3376_v42, %v2920_v33  ;;  %v2907_v8 = vor.u32 %v3372_v58, %v2904_v60 }
 0x232   :  { %1134 = vmatpush.bf16.msrb.mxu2 %v2899_v17  ;;  %v3378_v17 = vld [vmem:[#allocation8 + $0x1b4] sm:$0xf] }
 0x233   :  { %1110 = vmatpush.bf16.msra.mxu0 %v2863_v11  ;;  %v2931_v24 = vor.u32 %v3378_v17, %v2928_v18 }
 0x234   :  { %1150 = vmatpush.bf16.msrb.mxu3 %v2947_v59  ;;  %v2912_v59 = vld [vmem:[#allocation8 + $0x198] sm:$0xf0] }
 0x235   :  { %2834 = vmatmul.msk.f32.vlgmr.msra.gmra.mxu2 %vm333_vm1, %v4026_v0  ;;  %v2915_v50 = vor.u32 %v3374_v45, %v2912_v59 }
 0x236   :  { %1135 = vmatpush.bf16.msrb.mxu2 %v2891_v32  ;;  %v2856_v32 = vld [vmem:[#allocation8 + $0x128] sm:$0xf0] }
 0x237   :  { %v2859_v34 = vor.u32 %v3360_v28, %v2856_v32  ;;  %1111 = vmatpush.bf16.msra.mxu0 %v2855_v25 }
 0x238   :  { %1151 = vmatpush.bf16.msrb.mxu3 %v2939_v5  ;;  %v2843_v5 = vor.u32 %v3356_v52, %v2840_v53 }
 0x23a   :  { %1136 = vmatpush.bf16.msrb.mxu2 %v2883_v44 }
 0x23b   :  { %1112 = vmatpush.bf16.msra.mxu0 %v2847_v39 }
 0x23c   :  { %1152 = vmatpush.bf16.msrb.mxu3 %v2931_v24 }
 0x23e   :  { %1137 = vmatpush.bf16.msrb.mxu2 %v2875_v3 }
 0x23f   :  { %1113 = vmatpush.bf16.msra.mxu0 %v2839_v55 }
 0x240   :  { %1153 = vmatpush.bf16.msrb.mxu3 %v2923_v35 }
 0x244   :  { %1154 = vmatpush.bf16.msrb.mxu3 %v2915_v50 }
 0x248   :  { %1155 = vmatpush.bf16.msrb.mxu3 %v2907_v8 }
 0x2aa   :  { %v787_v21 = vpop.f32.mrf.mxu3 }
 0x2ab   :  { %v4101_v31 = vmul.f32 0.0625, %v787_v21  ;;  %v2867_v21 = vor.u32 %v3362_v13, %v2864_v16 }
 0x2ad   :  { %v839_v48 = vmul.f32 %v4101_v31, %v4101_v31  ;;  %1138 = vmatpush.bf16.msrb.mxu2 %v2867_v21 }
 0x2b0   :  { %v767_v40 = vpop.f32.mrf.mxu2 }
 0x2b1   :  { %v4105_v63 = vmul.f32 0.0625, %v767_v40  ;;  %v3375_v40 = vld [vmem:[#allocation8 + $0x194] sm:$0xf0]  ;;  %1139 = vmatpush.bf16.msrb.mxu2 %v2859_v34 }
 0x2b2   :  { %v833_v61 = vpop.f32.mrf.mxu3  ;;  %v2911_v44 = vor.u32 %v3375_v40, %v2910_v41 }
 0x2b3   :  { %v837_v49 = vmul.f32 0.0625, %v833_v61  ;;  %v838_v19 = vmul.f32 %v4105_v63, %v4105_v63 }
 0x2b4   :  { %1126 = vmatpush.bf16.msra.mxu1 %v2911_v44 }
 0x2b5   :  { %v841_v1 = vsub.f32 %v837_v49, %v839_v48  ;;  %v2902_v48 = vld [vmem:[#allocation8 + $0x180] sm:$0xf]  ;;  %1140 = vmatpush.bf16.msrb.mxu2 %v2851_v2 }
 0x2b6   :  { %v2903_v3 = vor.u32 %v3373_v51, %v2902_v48 }
 0x2b7   :  { %v4107_v10 = vadd.f32 1e-05, %v841_v1 }
 0x2b8   :  { %v813_v14 = vpop.f32.mrf.mxu2  ;;  %1127 = vmatpush.bf16.msra.mxu1 %v2903_v3 }
 0x2b9   :  { %3489 = vrsqrt.f32 %v4107_v10  ;;  %v836_v20 = vmul.f32 0.0625, %v813_v14  ;;  %1141 = vmatpush.bf16.msrb.mxu2 %v2843_v5  ;;  %vm860_vm10 = vweird.f32 %v4107_v10 }
 0x2bb   :  { %v840_v29 = vsub.f32 %v836_v20, %v838_v19  ;;  %v748_v20 = vld [vmem:[#allocation11] sm:$0x3] }
 0x2bd   :  { %v842_v38 = vadd.f32 1e-05, %v840_v29 }
 0x2bf   :  { %v3490_v61 = vpop.eup %3489  ;;  %3491 = vrsqrt.f32 %v842_v38  ;;  %vm850_vm13 = vweird.f32 %v842_v38 }
 0x2c0   :  { %v855_v49 = vmul.f32 %v3490_v61, %v4107_v10  ;;  %vm861_vm9 = vweird.f32 %v3490_v61 }
 0x2c1   :  { %vm862_vm11 = vmor %vm860_vm10, %vm861_vm9 }
 0x2c2   :  { %v856_v1 = vmul.f32 %v3490_v61, %v855_v49 }
 0x2c4   :  { %v857_v7 = vmul.f32 0.5, %v856_v1 }
 0x2c5   :  { %v3492_v9 = vpop.eup %3491 }
 0x2c6   :  { %v858_v11 = vsub.f32 1.5, %v857_v7  ;;  %v845_v12 = vmul.f32 %v3492_v9, %v842_v38  ;;  %vm851_vm12 = vweird.f32 %v3492_v9 }
 0x2c7   :  { %vm852_vm14 = vmor %vm850_vm13, %vm851_vm12 }
 0x2c8   :  { %v859_v13 = vmul.f32 %v3490_v61, %v858_v11  ;;  %v846_v14 = vmul.f32 %v3492_v9, %v845_v12 }
 0x2ca   :  { %v847_v15 = vmul.f32 0.5, %v846_v14  ;;  %v863_v16 = vsel %vm862_vm11, %v3490_v61, %v859_v13  ;;  %v940_v61 = vld [vmem:[#allocation10 + $0x2] sm:$0x3]  ;;  %v3026_v13 = vld [vmem:[#allocation8 + $0x270] sm:$0xf] }
 0x2cb   :  { %v866_v19 = vrot.slane %v863_v16, 7  ;;  %v942_v2 = vperm.slane %v940_v61, 0  ;;  %v943_v50 = vperm.slane %v940_v61, 1  ;;  %v3403_v14 = vld [vmem:[#allocation8 + $0x274] sm:$0xf0] }
 0x2cc   :  { %v848_v17 = vsub.f32 1.5, %v847_v15  ;;  %v3090_v15 = vld [vmem:[#allocation8 + $0x2f0] sm:$0xf]  ;;  %v3027_v16 = vor.u32 %v3403_v14, %v3026_v13  ;;  %v3397_v61 = vld [vmem:[#allocation8 + $0x244] sm:$0xf0] }
 0x2ce   :  { %v849_v18 = vmul.f32 %v3492_v9, %v848_v17  ;;  %v3419_v17 = vld [vmem:[#allocation8 + $0x2f4] sm:$0xf0]  ;;  %1522 = vmatpush.bf16.msrb.mxu0 %v3027_v16  ;;  %v3394_v16 = vld [vmem:[#allocation8 + $0x234] sm:$0xf] }
 0x2d0   :  { %v853_v21 = vsel %vm852_vm14, %v3492_v9, %v849_v18  ;;  %v3402_v18 = vld [vmem:[#allocation8 + $0x274] sm:$0xf] }
 0x2d1   :  { %v867_v22 = vsel %vm454_vm7, %v853_v21, %v866_v19  ;;  %v3028_v19 = vld [vmem:[#allocation8 + $0x278] sm:$0xf0] }
 0x2d2   :  { %v869_v23 = vmul.f32 %v867_v22, %v748_v20  ;;  %v3091_v20 = vor.u32 %v3419_v17, %v3090_v15  ;;  %v3031_v21 = vor.u32 %v3402_v18, %v3028_v19  ;;  %v3418_v22 = vld [vmem:[#allocation8 + $0x2f4] sm:$0xf]  ;;  %v3411_v15 = vld [vmem:[#allocation8 + $0x2b4] sm:$0xf0]  ;;  %v2996_v17 = vld [vmem:[#allocation8 + $0x238] sm:$0xf0] }
 0x2d4   :  { %v871_v24 = vperm.slane %v869_v23, 0  ;;  %v872_v25 = vperm.slane %v869_v23, 1  ;;  %v3092_v23 = vld [vmem:[#allocation8 + $0x2f8] sm:$0xf0] }
 0x2d6   :  { %v876_v26 = vmul.f32 %v872_v25, %v4101_v31  ;;  %v875_v10 = vmul.f32 %v871_v24, %v4105_v63  ;;  %v883_v32 = vmul.f32 %v871_v24, %v4087_v6  ;;  %v885_v42 = vmul.f32 %v871_v24, %v4083_v4 }
 0x2d7   :  { %v884_v34 = vmul.f32 %v872_v25, %v4075_v57  ;;  %v886_v35 = vmul.f32 %v872_v25, %v4073_v56  ;;  %v3095_v24 = vor.u32 %v3418_v22, %v3092_v23  ;;  %v3018_v25 = vld [vmem:[#allocation8 + $0x260] sm:$0xf]  ;;  %v3410_v22 = vld [vmem:[#allocation8 + $0x2b4] sm:$0xf]  ;;  %v3060_v23 = vld [vmem:[#allocation8 + $0x2b8] sm:$0xf0] }
 0x2d8   :  { %v879_v28 = vrot.slane %v876_v26, 7  ;;  %v3401_v26 = vld [vmem:[#allocation8 + $0x264] sm:$0xf0] }
 0x2da   :  { %v880_v29 = vsel %vm454_vm7, %v875_v10, %v879_v28  ;;  %v3082_v10 = vld [vmem:[#allocation8 + $0x2e0] sm:$0xf]  ;;  %v3417_v28 = vld [vmem:[#allocation8 + $0x2e4] sm:$0xf0] }
 0x2db   :  { %v882_v30 = vsub.f32 %v749_v27, %v880_v29  ;;  %v3019_v27 = vor.u32 %v3401_v26, %v3018_v25  ;;  %v3400_v29 = vld [vmem:[#allocation8 + $0x264] sm:$0xf]  ;;  %v2986_v25 = vld [vmem:[#allocation8 + $0x220] sm:$0xf]  ;;  %v3393_v26 = vld [vmem:[#allocation8 + $0x224] sm:$0xf0] }
 0x2dd   :  { %v888_v33 = vperm.slane %v882_v30, 0  ;;  %v889_v36 = vperm.slane %v882_v30, 1  ;;  %v3020_v30 = vld [vmem:[#allocation8 + $0x268] sm:$0xf0]  ;;  %1523 = vmatpush.bf16.msrb.mxu0 %v3019_v27 }
 0x2df   :  { %v892_v37 = vadd.f32 %v888_v33, %v883_v32  ;;  %v894_v41 = vadd.f32 %v888_v33, %v885_v42  ;;  %v893_v31 = vadd.f32 %v889_v36, %v884_v34  ;;  %v895_v38 = vadd.f32 %v889_v36, %v886_v35  ;;  %v3416_v33 = vld [vmem:[#allocation8 + $0x2e4] sm:$0xf]  ;;  %v3084_v34 = vld [vmem:[#allocation8 + $0x2e8] sm:$0xf0] }
 0x2e0   :  { %v3083_v32 = vor.u32 %v3417_v28, %v3082_v10  ;;  %v3023_v42 = vor.u32 %v3400_v29, %v3020_v30  ;;  %v3087_v35 = vor.u32 %v3416_v33, %v3084_v34  ;;  %v3050_v10 = vld [vmem:[#allocation8 + $0x2a0] sm:$0xf]  ;;  %v2987_v29 = vor.u32 %v3393_v26, %v2986_v25  ;;  %v3409_v30 = vld [vmem:[#allocation8 + $0x2a4] sm:$0xf0]  ;;  %v3408_v34 = vld [vmem:[#allocation8 + $0x2a4] sm:$0xf] }
 0x2e1   :  { %v896_v63 = vmul.f32 0.01, %v892_v37  ;;  %v898_v39 = vmul.f32 0.01, %v894_v41  ;;  %v897_v40 = vmul.f32 0.01, %v893_v31  ;;  %v3051_v33 = vor.u32 %v3409_v30, %v3050_v10 }
 0x2e2   :  { %v899_v43 = vmul.f32 0.01, %v895_v38 }
 0x2e3   :  { %v900_v44 = vmax.f32 %v892_v37, %v896_v63  ;;  %v902_v62 = vmax.f32 %v894_v41, %v898_v39  ;;  %v901_v45 = vmax.f32 %v893_v31, %v897_v40  ;;  %v3010_v41 = vld [vmem:[#allocation8 + $0x250] sm:$0xf]  ;;  %v3399_v31 = vld [vmem:[#allocation8 + $0x254] sm:$0xf0] }
 0x2e4   :  { %v903_v6 = vmax.f32 %v895_v38, %v899_v43  ;;  %v3011_v38 = vor.u32 %v3399_v31, %v3010_v41  ;;  %v3074_v63 = vld [vmem:[#allocation8 + $0x2d0] sm:$0xf]  ;;  %v3415_v39 = vld [vmem:[#allocation8 + $0x2d4] sm:$0xf0]  ;;  %v3398_v43 = vld [vmem:[#allocation8 + $0x254] sm:$0xf] }
 0x2e5   :  { %v904_v59 = vpack.c.bf16 %v902_v62, %v900_v44  ;;  %v3075_v40 = vor.u32 %v3415_v39, %v3074_v63  ;;  %v3012_v44 = vld [vmem:[#allocation8 + $0x258] sm:$0xf0]  ;;  %v3414_v62 = vld [vmem:[#allocation8 + $0x2d4] sm:$0xf]  ;;  %v3042_v39 = vld [vmem:[#allocation8 + $0x290] sm:$0xf] }
 0x2e6   :  { %v905_v4 = vpack.c.bf16 %v903_v6, %v901_v45  ;;  %1524 = vmatpush.bf16.msrb.mxu0 %v3011_v38  ;;  %v3391_v38 = vld [vmem:[#allocation8 + $0x214] sm:$0xf0] }
 0x2e7   :  { %1114 = vmatmul.bf16.vlgmr.msra.gmra.mxu0 %v904_v59  ;;  %1142 = vmatmul.bf16.vlgmr.msrb.gmra.mxu2 %v904_v59  ;;  %v3015_v59 = vor.u32 %v3398_v43, %v3012_v44  ;;  %v3390_v43 = vld [vmem:[#allocation8 + $0x214] sm:$0xf] }
 0x2e8   :  { %1128 = vmatmul.bf16.vlgmr.msra.gmra.mxu1 %v905_v4  ;;  %1156 = vmatmul.bf16.vlgmr.msrb.gmra.mxu3 %v905_v4  ;;  %v3076_v4 = vld [vmem:[#allocation8 + $0x2d8] sm:$0xf0] }
 0x364   :  { %v1115_v56 = vpop.f32.mrf.mxu0 }
 0x365   :  { %v1129_v57 = vpop.f32.mrf.mxu1  ;;  %v1116_v49 = vadd.f32 %v1115_v56, %v942_v2  ;;  %v3079_v56 = vor.u32 %v3414_v62, %v3076_v4  ;;  %v2980_v62 = vld [vmem:[#allocation8 + $0x218] sm:$0xf0] }
 0x366   :  { %v3044_v4 = vld [vmem:[#allocation8 + $0x298] sm:$0xf0] }
 0x367   :  { %v4124_v55 = vadd.f32 %v1129_v57, %v1116_v49  ;;  %v3002_v57 = vld [vmem:[#allocation8 + $0x240] sm:$0xf]  ;;  %v3004_v49 = vld [vmem:[#allocation8 + $0x248] sm:$0xf0] }
 0x369   :  { %v1208_v9 = vmul.f32 %v4124_v55, %v4124_v55 }
 0x36a   :  { %v1143_v46 = vpop.f32.mrf.mxu2 }
 0x36b   :  { %v1157_v47 = vpop.f32.mrf.mxu3  ;;  %v1144_v58 = vadd.f32 %v1143_v46, %v943_v50  ;;  %v3003_v46 = vor.u32 %v3397_v61, %v3002_v57  ;;  %v2970_v57 = vld [vmem:[#allocation8 + $0x200] sm:$0xf]  ;;  %v3389_v61 = vld [vmem:[#allocation8 + $0x204] sm:$0xf0] }
 0x36c   :  { %v1117_v48 = vpop.f32.mrf.mxu0 }
 0x36d   :  { %v1118_v51 = vadd.f32 %v1117_v48, %v942_v2  ;;  %v1131_v52 = vpop.f32.mrf.mxu1  ;;  %v4132_v7 = vadd.f32 %v1157_v47, %v1144_v58  ;;  %v3066_v2 = vld [vmem:[#allocation8 + $0x2c0] sm:$0xf]  ;;  %v3413_v47 = vld [vmem:[#allocation8 + $0x2c4] sm:$0xf0]  ;;  %v3396_v48 = vld [vmem:[#allocation8 + $0x244] sm:$0xf]  ;;  %1525 = vmatpush.bf16.msrb.mxu0 %v3003_v46 }
 0x36e   :  { %v3068_v58 = vld [vmem:[#allocation8 + $0x2c8] sm:$0xf0]  ;;  %v3034_v46 = vld [vmem:[#allocation8 + $0x280] sm:$0xf] }
 0x36f   :  { %v4122_v53 = vadd.f32 %v1131_v52, %v1118_v51  ;;  %v1209_v12 = vmul.f32 %v4132_v7, %v4132_v7  ;;  %v3007_v51 = vor.u32 %v3396_v48, %v3004_v49  ;;  %v3412_v52 = vld [vmem:[#allocation8 + $0x2c4] sm:$0xf] }
 0x370   :  { %v3388_v49 = vld [vmem:[#allocation8 + $0x204] sm:$0xf] }
 0x371   :  { %v1210_v60 = vmul.f32 %v4122_v53, %v4122_v53  ;;  %1180 = vmatpush.msra.mxu2 %v4122_v53 }
 0x372   :  { %v1145_v1 = vpop.f32.mrf.mxu2 }
 0x373   :  { %v1146_v3 = vadd.f32 %v1145_v1, %v943_v50  ;;  %1181 = vmatpush.msra.mxu2 %v4124_v55  ;;  %v1159_v5 = vpop.f32.mrf.mxu3  ;;  %v3067_v50 = vor.u32 %v3413_v47, %v3066_v2  ;;  %v3071_v1 = vor.u32 %v3412_v52, %v3068_v58  ;;  %v2983_v2 = vor.u32 %v3390_v43, %v2980_v62  ;;  %v3405_v47 = vld [vmem:[#allocation8 + $0x284] sm:$0xf0]  ;;  %v3404_v52 = vld [vmem:[#allocation8 + $0x284] sm:$0xf]  ;;  %v3036_v58 = vld [vmem:[#allocation8 + $0x288] sm:$0xf0] }
 0x374   :  { %2964 = vmatmul.msk.f32.vlgmr.msra.gmra.mxu2 %vm333_vm1, %v4026_v0 }
 0x375   :  { %v4134_v8 = vadd.f32 %v1159_v5, %v1146_v3  ;;  %1226 = vmatpush.msrb.mxu2 %v1210_v60  ;;  %v2994_v3 = vld [vmem:[#allocation8 + $0x230] sm:$0xf]  ;;  %v3395_v5 = vld [vmem:[#allocation8 + $0x234] sm:$0xf0] }
 0x376   :  { %v2995_v14 = vor.u32 %v3395_v5, %v2994_v3 }
 0x377   :  { %v1211_v11 = vmul.f32 %v4134_v8, %v4134_v8  ;;  %1227 = vmatpush.msrb.mxu2 %v1208_v9  ;;  %1200 = vmatpush.msrb.mxu1 %v4134_v8  ;;  %v3058_v9 = vld [vmem:[#allocation8 + $0x2b0] sm:$0xf] }
 0x378   :  { %1526 = vmatpush.bf16.msrb.mxu0 %v2995_v14 }
 0x379   :  { %1201 = vmatpush.msrb.mxu1 %v4132_v7  ;;  %1246 = vmatpush.msra.mxu3 %v1211_v11 }
 0x37a   :  { %2965 = vmatmul.msk.f32.vlgmr.msrb.gmra.mxu1 %vm333_vm1, %v4026_v0  ;;  %1550 = vmatpush.bf16.msra.mxu2 %v3031_v21  ;;  %v2999_v21 = vor.u32 %v3394_v16, %v2996_v17 }
 0x37b   :  { %1247 = vmatpush.msra.mxu3 %v1209_v12  ;;  %1536 = vmatpush.bf16.msra.mxu1 %v3091_v20  ;;  %v3059_v20 = vor.u32 %v3411_v15, %v3058_v9 }
 0x37c   :  { %2966 = vmatmul.msk.f32.vlgmr.msrb.gmra.mxu2 %vm333_vm1, %v4026_v0  ;;  %2967 = vmatmul.msk.f32.vlgmr.msra.gmra.mxu3 %vm333_vm1, %v4026_v0 }
 0x37d   :  { %1564 = vmatpush.bf16.msrb.mxu3 %v3095_v24  ;;  %v3063_v24 = vor.u32 %v3410_v22, %v3060_v23  ;;  %1527 = vmatpush.bf16.msrb.mxu0 %v2987_v29  ;;  %v1163_v22 = vld [vmem:[#allocation11 + $0x2] sm:$0x3]  ;;  %v1165_v29 = vld [vmem:[#allocation13 + $0x2] sm:$0x3] }
 0x37e   :  { %1551 = vmatpush.bf16.msra.mxu2 %v3023_v42  ;;  %v2988_v42 = vld [vmem:[#allocation8 + $0x228] sm:$0xf0] }
 0x37f   :  { %1537 = vmatpush.bf16.msra.mxu1 %v3083_v32  ;;  %v3392_v32 = vld [vmem:[#allocation8 + $0x224] sm:$0xf] }
 0x380   :  { %v2991_v31 = vor.u32 %v3392_v32, %v2988_v42 }
 0x381   :  { %1565 = vmatpush.bf16.msrb.mxu3 %v3087_v35  ;;  %v3052_v35 = vld [vmem:[#allocation8 + $0x2a8] sm:$0xf0] }
 0x382   :  { %1552 = vmatpush.bf16.msra.mxu2 %v3015_v59  ;;  %v3055_v63 = vor.u32 %v3408_v34, %v3052_v35  ;;  %v3406_v59 = vld [vmem:[#allocation8 + $0x294] sm:$0xf] }
 0x383   :  { %1538 = vmatpush.bf16.msra.mxu1 %v3075_v40  ;;  %v3407_v40 = vld [vmem:[#allocation8 + $0x294] sm:$0xf0]  ;;  %v3047_v48 = vor.u32 %v3406_v59, %v3044_v4 }
 0x385   :  { %1566 = vmatpush.bf16.msrb.mxu3 %v3079_v56  ;;  %v3043_v56 = vor.u32 %v3407_v40, %v3042_v39 }
 0x386   :  { %1553 = vmatpush.bf16.msra.mxu2 %v3007_v51  ;;  %v2971_v51 = vor.u32 %v3389_v61, %v2970_v57 }
 0x387   :  { %1539 = vmatpush.bf16.msra.mxu1 %v3067_v50  ;;  %v2972_v50 = vld [vmem:[#allocation8 + $0x208] sm:$0xf0] }
 0x388   :  { %v2975_v3 = vor.u32 %v3388_v49, %v2972_v50 }
 0x389   :  { %1567 = vmatpush.bf16.msrb.mxu3 %v3071_v1 }
 0x38a   :  { %1554 = vmatpush.bf16.msra.mxu2 %v2999_v21 }
 0x38b   :  { %1540 = vmatpush.bf16.msra.mxu1 %v3059_v20 }
 0x38d   :  { %1568 = vmatpush.bf16.msrb.mxu3 %v3063_v24 }
 0x38e   :  { %1555 = vmatpush.bf16.msra.mxu2 %v2991_v31 }
 0x38f   :  { %1541 = vmatpush.bf16.msra.mxu1 %v3051_v33 }
 0x391   :  { %1569 = vmatpush.bf16.msrb.mxu3 %v3055_v63 }
 0x392   :  { %1556 = vmatpush.bf16.msra.mxu2 %v2983_v2 }
 0x393   :  { %1542 = vmatpush.bf16.msra.mxu1 %v3043_v56 }
 0x395   :  { %1570 = vmatpush.bf16.msrb.mxu3 %v3047_v48 }
 0x396   :  { %1557 = vmatpush.bf16.msra.mxu2 %v2975_v3 }
 0x3f7   :  { %v1183_v36 = vpop.f32.mrf.mxu2  ;;  %v1203_v37 = vpop.f32.mrf.mxu1 }
 0x3f8   :  { %v4150_v45 = vmul.f32 0.0625, %v1183_v36  ;;  %v4152_v6 = vmul.f32 0.0625, %v1203_v37  ;;  %v2978_v36 = vld [vmem:[#allocation8 + $0x210] sm:$0xf] }
 0x3f9   :  { %v2979_v44 = vor.u32 %v3391_v38, %v2978_v36 }
 0x3fa   :  { %v1255_v60 = vmul.f32 %v4152_v6, %v4152_v6  ;;  %v1254_v11 = vmul.f32 %v4150_v45, %v4150_v45 }
 0x3fb   :  { %1528 = vmatpush.bf16.msrb.mxu0 %v2979_v44 }
 0x3ff   :  { %v1229_v12 = vpop.f32.mrf.mxu2  ;;  %v1249_v13 = vpop.f32.mrf.mxu3  ;;  %1529 = vmatpush.bf16.msrb.mxu0 %v2971_v51 }
 0x400   :  { %v1252_v18 = vmul.f32 0.0625, %v1229_v12  ;;  %v1253_v19 = vmul.f32 0.0625, %v1249_v13 }
 0x402   :  { %v1256_v27 = vsub.f32 %v1252_v18, %v1254_v11  ;;  %v1257_v28 = vsub.f32 %v1253_v19, %v1255_v60  ;;  %v3035_v60 = vor.u32 %v3405_v47, %v3034_v46  ;;  %v3039_v11 = vor.u32 %v3404_v52, %v3036_v58 }
 0x404   :  { %v1258_v37 = vadd.f32 1e-05, %v1256_v27  ;;  %v1259_v41 = vadd.f32 1e-05, %v1257_v28  ;;  %1543 = vmatpush.bf16.msra.mxu1 %v3035_v60  ;;  %1571 = vmatpush.bf16.msrb.mxu3 %v3039_v11 }
 0x406   :  { %3493 = vrsqrt.f32 %v1258_v37  ;;  %vm1276_vm2 = vweird.f32 %v1259_v41  ;;  %vm1266_vm4 = vweird.f32 %v1258_v37 }
 0x407   :  { %3495 = vrsqrt.f32 %v1259_v41 }
 0x40c   :  { %v3494_v1 = vpop.eup %3493 }
 0x40d   :  { %v3496_v5 = vpop.eup %3495  ;;  %v1261_v9 = vmul.f32 %v3494_v1, %v1258_v37  ;;  %vm1267_vm0 = vweird.f32 %v3494_v1 }
 0x40e   :  { %v1271_v12 = vmul.f32 %v3496_v5, %v1259_v41  ;;  %vm1277_vm15 = vweird.f32 %v3496_v5  ;;  %vm1268_vm5 = vmor %vm1266_vm4, %vm1267_vm0  ;;  %vm2361_vm4 = vcmask 367616  }
 0x40f   :  { %v1262_v13 = vmul.f32 %v3494_v1, %v1261_v9  ;;  %vm1278_vm3 = vmor %vm1276_vm2, %vm1277_vm15 }
 0x410   :  { %v1272_v14 = vmul.f32 %v3496_v5, %v1271_v12 }
 0x411   :  { %v1263_v15 = vmul.f32 0.5, %v1262_v13 }
 0x412   :  { %v1273_v16 = vmul.f32 0.5, %v1272_v14 }
 0x413   :  { %v1264_v17 = vsub.f32 1.5, %v1263_v15 }
 0x414   :  { %v1274_v18 = vsub.f32 1.5, %v1273_v16  ;;  %v3158_v16 = vld [vmem:[#allocation8 + $0x370] sm:$0xf] }
 0x415   :  { %v1265_v19 = vmul.f32 %v3494_v1, %v1264_v17  ;;  %v3435_v17 = vld [vmem:[#allocation8 + $0x374] sm:$0xf0] }
 0x416   :  { %v1275_v20 = vmul.f32 %v3496_v5, %v1274_v18  ;;  %v3222_v18 = vld [vmem:[#allocation8 + $0x3f0] sm:$0xf] }
 0x417   :  { %v1269_v24 = vsel %vm1268_vm5, %v3494_v1, %v1265_v19  ;;  %v3159_v19 = vor.u32 %v3435_v17, %v3158_v16  ;;  %v3427_v17 = vld [vmem:[#allocation8 + $0x334] sm:$0xf0] }
 0x418   :  { %v1279_v21 = vsel %vm1278_vm3, %v3496_v5, %v1275_v20  ;;  %v3451_v20 = vld [vmem:[#allocation8 + $0x3f4] sm:$0xf0] }
 0x419   :  { %v1282_v23 = vrot.slane %v1279_v21, 7  ;;  %v3434_v21 = vld [vmem:[#allocation8 + $0x374] sm:$0xf] }
 0x41b   :  { %v1283_v25 = vsel %vm454_vm7, %v1269_v24, %v1282_v23  ;;  %v3223_v24 = vor.u32 %v3451_v20, %v3222_v18  ;;  %v3190_v18 = vld [vmem:[#allocation8 + $0x3b0] sm:$0xf] }
 0x41c   :  { %v1285_v26 = vmul.f32 %v1283_v25, %v1163_v22  ;;  %v3160_v22 = vld [vmem:[#allocation8 + $0x378] sm:$0xf0] }
 0x41d   :  { %v3163_v25 = vor.u32 %v3434_v21, %v3160_v22  ;;  %v3443_v21 = vld [vmem:[#allocation8 + $0x3b4] sm:$0xf0]  ;;  %v3426_v22 = vld [vmem:[#allocation8 + $0x334] sm:$0xf] }
 0x41e   :  { %v1288_v10 = vperm.slane %v1285_v26, 1  ;;  %v1287_v27 = vperm.slane %v1285_v26, 0  ;;  %v3450_v26 = vld [vmem:[#allocation8 + $0x3f4] sm:$0xf] }
 0x420   :  { %v1292_v28 = vmul.f32 %v1288_v10, %v4152_v6  ;;  %v1291_v30 = vmul.f32 %v1287_v27, %v4150_v45  ;;  %v1299_v34 = vmul.f32 %v1287_v27, %v4124_v55  ;;  %v1301_v35 = vmul.f32 %v1287_v27, %v4122_v53 }
 0x421   :  { %v1300_v37 = vmul.f32 %v1288_v10, %v4132_v7  ;;  %v1302_v41 = vmul.f32 %v1288_v10, %v4134_v8  ;;  %v1356_v7 = vld [vmem:[#allocation10 + $0x4] sm:$0x3]  ;;  %v3224_v10 = vld [vmem:[#allocation8 + $0x3f8] sm:$0xf0] }
 0x422   :  { %v1295_v32 = vrot.slane %v1292_v28, 7  ;;  %v1358_v61 = vperm.slane %v1356_v7, 0  ;;  %v1359_v49 = vperm.slane %v1356_v7, 1  ;;  %v3227_v28 = vor.u32 %v3450_v26, %v3224_v10  ;;  %v3442_v26 = vld [vmem:[#allocation8 + $0x3b4] sm:$0xf] }
 0x423   :  { %v3192_v10 = vld [vmem:[#allocation8 + $0x3b8] sm:$0xf0] }
 0x424   :  { %v1296_v42 = vsel %vm454_vm7, %v1291_v30, %v1295_v32  ;;  %v3433_v30 = vld [vmem:[#allocation8 + $0x364] sm:$0xf0]  ;;  %v3214_v32 = vld [vmem:[#allocation8 + $0x3e0] sm:$0xf] }
 0x425   :  { %v1298_v33 = vsub.f32 %v1165_v29, %v1296_v42  ;;  %v3150_v29 = vld [vmem:[#allocation8 + $0x360] sm:$0xf] }
 0x426   :  { %v3151_v42 = vor.u32 %v3433_v30, %v3150_v29  ;;  %v3195_v29 = vor.u32 %v3442_v26, %v3192_v10  ;;  %v3118_v30 = vld [vmem:[#allocation8 + $0x320] sm:$0xf]  ;;  %v1579_v26 = vld [vmem:[#allocation11 + $0x4] sm:$0x3] }
 0x427   :  { %v1304_v36 = vperm.slane %v1298_v33, 0  ;;  %v1305_v31 = vperm.slane %v1298_v33, 1  ;;  %v3449_v33 = vld [vmem:[#allocation8 + $0x3e4] sm:$0xf0] }
 0x429   :  { %v1308_v38 = vadd.f32 %v1304_v36, %v1299_v34  ;;  %v1310_v63 = vadd.f32 %v1304_v36, %v1301_v35  ;;  %v1309_v6 = vadd.f32 %v1305_v31, %v1300_v37  ;;  %v1311_v39 = vadd.f32 %v1305_v31, %v1302_v41  ;;  %v3432_v34 = vld [vmem:[#allocation8 + $0x364] sm:$0xf]  ;;  %v3152_v35 = vld [vmem:[#allocation8 + $0x368] sm:$0xf0] }
 0x42a   :  { %v3215_v36 = vor.u32 %v3449_v33, %v3214_v32  ;;  %v3155_v37 = vor.u32 %v3432_v34, %v3152_v35  ;;  %v3448_v41 = vld [vmem:[#allocation8 + $0x3e4] sm:$0xf]  ;;  %v3216_v31 = vld [vmem:[#allocation8 + $0x3e8] sm:$0xf0]  ;;  %v3425_v32 = vld [vmem:[#allocation8 + $0x324] sm:$0xf0] }
 0x42b   :  { %v1312_v40 = vmul.f32 0.01, %v1308_v38  ;;  %v1314_v45 = vmul.f32 0.01, %v1310_v63  ;;  %v1313_v43 = vmul.f32 0.01, %v1309_v6  ;;  %v3119_v34 = vor.u32 %v3425_v32, %v3118_v30 }
 0x42c   :  { %v1315_v44 = vmul.f32 0.01, %v1311_v39  ;;  %v3441_v35 = vld [vmem:[#allocation8 + $0x3a4] sm:$0xf0] }
 0x42d   :  { %v1316_v62 = vmax.f32 %v1308_v38, %v1312_v40  ;;  %v1318_v59 = vmax.f32 %v1310_v63, %v1314_v45  ;;  %v1317_v4 = vmax.f32 %v1309_v6, %v1313_v43  ;;  %v3219_v38 = vor.u32 %v3448_v41, %v3216_v31  ;;  %v3142_v6 = vld [vmem:[#allocation8 + $0x350] sm:$0xf]  ;;  %v3440_v31 = vld [vmem:[#allocation8 + $0x3a4] sm:$0xf] }
 0x42e   :  { %v1319_v55 = vmax.f32 %v1311_v39, %v1315_v44  ;;  %v3431_v39 = vld [vmem:[#allocation8 + $0x354] sm:$0xf0]  ;;  %v3206_v40 = vld [vmem:[#allocation8 + $0x3d0] sm:$0xf] }
 0x42f   :  { %v1320_v56 = vpack.c.bf16 %v1318_v59, %v1316_v62  ;;  %v3143_v43 = vor.u32 %v3431_v39, %v3142_v6  ;;  %v3447_v44 = vld [vmem:[#allocation8 + $0x3d4] sm:$0xf0]  ;;  %v3430_v62 = vld [vmem:[#allocation8 + $0x354] sm:$0xf] }
 0x430   :  { %v1321_v53 = vpack.c.bf16 %v1319_v55, %v1317_v4  ;;  %v3207_v4 = vor.u32 %v3447_v44, %v3206_v40  ;;  %v3144_v55 = vld [vmem:[#allocation8 + $0x358] sm:$0xf0]  ;;  %v3439_v44 = vld [vmem:[#allocation8 + $0x394] sm:$0xf0] }
 0x431   :  { %1530 = vmatmul.bf16.vlgmr.msrb.gmra.mxu0 %v1320_v56  ;;  %1558 = vmatmul.bf16.vlgmr.msra.gmra.mxu2 %v1320_v56  ;;  %v3446_v56 = vld [vmem:[#allocation8 + $0x3d4] sm:$0xf] }
 0x432   :  { %1544 = vmatmul.bf16.vlgmr.msra.gmra.mxu1 %v1321_v53  ;;  %1572 = vmatmul.bf16.vlgmr.msrb.gmra.mxu3 %v1321_v53  ;;  %v3208_v53 = vld [vmem:[#allocation8 + $0x3d8] sm:$0xf0] }
 0x4ae   :  { %v1531_v8 = vpop.f32.mrf.mxu0 }
 0x4af   :  { %v1545_v57 = vpop.f32.mrf.mxu1  ;;  %v1532_v46 = vadd.f32 %v1531_v8, %v1358_v61 }
 0x4b1   :  { %v4166_v52 = vadd.f32 %v1545_v57, %v1532_v46  ;;  %v3147_v57 = vor.u32 %v3430_v62, %v3144_v55  ;;  %v3429_v46 = vld [vmem:[#allocation8 + $0x344] sm:$0xf0]  ;;  %v3422_v62 = vld [vmem:[#allocation8 + $0x314] sm:$0xf] }
 0x4b3   :  { %v1624_v9 = vmul.f32 %v4166_v52, %v4166_v52 }
 0x4b4   :  { %v1559_v2 = vpop.f32.mrf.mxu2 }
 0x4b5   :  { %v1573_v47 = vpop.f32.mrf.mxu3  ;;  %v1560_v60 = vadd.f32 %v1559_v2, %v1359_v49  ;;  %v3134_v2 = vld [vmem:[#allocation8 + $0x340] sm:$0xf] }
 0x4b6   :  { %v1533_v48 = vpop.f32.mrf.mxu0 }
 0x4b7   :  { %v1534_v50 = vadd.f32 %v1533_v48, %v1358_v61  ;;  %v1547_v51 = vpop.f32.mrf.mxu1  ;;  %v4178_v12 = vadd.f32 %v1573_v47, %v1560_v60  ;;  %v3211_v61 = vor.u32 %v3446_v56, %v3208_v53  ;;  %v3198_v47 = vld [vmem:[#allocation8 + $0x3c0] sm:$0xf]  ;;  %v3136_v60 = vld [vmem:[#allocation8 + $0x348] sm:$0xf0]  ;;  %v3438_v56 = vld [vmem:[#allocation8 + $0x394] sm:$0xf] }
 0x4b8   :  { %v3176_v53 = vld [vmem:[#allocation8 + $0x398] sm:$0xf0] }
 0x4b9   :  { %v4168_v58 = vadd.f32 %v1547_v51, %v1534_v50  ;;  %v1625_v15 = vmul.f32 %v4178_v12, %v4178_v12  ;;  %v3445_v50 = vld [vmem:[#allocation8 + $0x3c4] sm:$0xf0]  ;;  %v3428_v51 = vld [vmem:[#allocation8 + $0x344] sm:$0xf] }
 0x4bb   :  { %v1626_v1 = vmul.f32 %v4168_v58, %v4168_v58  ;;  %1596 = vmatpush.msra.mxu0 %v4168_v58 }
 0x4bc   :  { %v1561_v3 = vpop.f32.mrf.mxu2 }
 0x4bd   :  { %v1562_v5 = vadd.f32 %v1561_v3, %v1359_v49  ;;  %1597 = vmatpush.msra.mxu0 %v4166_v52  ;;  %1642 = vmatpush.msrb.mxu2 %v1626_v1  ;;  %v1575_v11 = vpop.f32.mrf.mxu3  ;;  %v3135_v49 = vor.u32 %v3429_v46, %v3134_v2  ;;  %v3199_v1 = vor.u32 %v3445_v50, %v3198_v47  ;;  %v3421_v2 = vld [vmem:[#allocation8 + $0x304] sm:$0xf0]  ;;  %v3420_v50 = vld [vmem:[#allocation8 + $0x304] sm:$0xf] }
 0x4be   :  { %3096 = vmatmul.msk.f32.vlgmr.msra.gmra.mxu0 %vm333_vm1, %v4026_v0  ;;  %v3139_v3 = vor.u32 %v3428_v51, %v3136_v60  ;;  %v3179_v47 = vor.u32 %v3438_v56, %v3176_v53  ;;  %v3104_v60 = vld [vmem:[#allocation8 + $0x308] sm:$0xf0] }
 0x4bf   :  { %v4180_v13 = vadd.f32 %v1575_v11, %v1562_v5  ;;  %1643 = vmatpush.msrb.mxu2 %v1624_v9  ;;  %1938 = vmatpush.bf16.msrb.mxu0 %v3159_v19  ;;  %v3444_v5 = vld [vmem:[#allocation8 + $0x3c4] sm:$0xf]  ;;  %v3200_v9 = vld [vmem:[#allocation8 + $0x3c8] sm:$0xf0]  ;;  %v3126_v11 = vld [vmem:[#allocation8 + $0x330] sm:$0xf] }
 0x4c0   :  { %3098 = vmatmul.msk.f32.vlgmr.msrb.gmra.mxu2 %vm333_vm1, %v4026_v0  ;;  %v3203_v16 = vor.u32 %v3444_v5, %v3200_v9  ;;  %v3127_v20 = vor.u32 %v3427_v17, %v3126_v11 }
 0x4c1   :  { %v1627_v14 = vmul.f32 %v4180_v13, %v4180_v13  ;;  %1616 = vmatpush.msrb.mxu1 %v4180_v13  ;;  %1966 = vmatpush.bf16.msra.mxu2 %v3163_v25  ;;  %v3191_v25 = vor.u32 %v3443_v21, %v3190_v18 }
 0x4c3   :  { %1617 = vmatpush.msrb.mxu1 %v4178_v12  ;;  %1662 = vmatpush.msra.mxu3 %v1627_v14 }
 0x4c4   :  { %3097 = vmatmul.msk.f32.vlgmr.msrb.gmra.mxu1 %vm333_vm1, %v4026_v0  ;;  %1939 = vmatpush.bf16.msrb.mxu0 %v3151_v42  ;;  %v3182_v42 = vld [vmem:[#allocation8 + $0x3a0] sm:$0xf] }
 0x4c5   :  { %1663 = vmatpush.msra.mxu3 %v1625_v15  ;;  %1952 = vmatpush.bf16.msra.mxu1 %v3223_v24  ;;  %v3183_v41 = vor.u32 %v3441_v35, %v3182_v42 }
 0x4c6   :  { %3099 = vmatmul.msk.f32.vlgmr.msra.gmra.mxu3 %vm333_vm1, %v4026_v0  ;;  %1967 = vmatpush.bf16.msra.mxu2 %v3155_v37  ;;  %v3120_v37 = vld [vmem:[#allocation8 + $0x328] sm:$0xf0] }
 0x4c7   :  { %1980 = vmatpush.bf16.msrb.mxu3 %v3227_v28 }
 0x4c8   :  { %1940 = vmatpush.bf16.msrb.mxu0 %v3143_v43  ;;  %v3174_v43 = vld [vmem:[#allocation8 + $0x390] sm:$0xf] }
 0x4c9   :  { %1953 = vmatpush.bf16.msra.mxu1 %v3215_v36  ;;  %v3424_v36 = vld [vmem:[#allocation8 + $0x324] sm:$0xf] }
 0x4ca   :  { %1968 = vmatpush.bf16.msra.mxu2 %v3147_v57  ;;  %v3123_v39 = vor.u32 %v3424_v36, %v3120_v37  ;;  %v3175_v57 = vor.u32 %v3439_v44, %v3174_v43 }
 0x4cb   :  { %1981 = vmatpush.bf16.msrb.mxu3 %v3219_v38  ;;  %v3184_v38 = vld [vmem:[#allocation8 + $0x3a8] sm:$0xf0] }
 0x4cc   :  { %1941 = vmatpush.bf16.msrb.mxu0 %v3135_v49  ;;  %v3187_v40 = vor.u32 %v3440_v31, %v3184_v38  ;;  %v3437_v49 = vld [vmem:[#allocation8 + $0x384] sm:$0xf0] }
 0x4cd   :  { %1954 = vmatpush.bf16.msra.mxu1 %v3207_v4 }
 0x4ce   :  { %1969 = vmatpush.bf16.msra.mxu2 %v3139_v3  ;;  %v3168_v3 = vld [vmem:[#allocation8 + $0x388] sm:$0xf0] }
 0x4cf   :  { %1982 = vmatpush.bf16.msrb.mxu3 %v3211_v61  ;;  %v3102_v61 = vld [vmem:[#allocation8 + $0x300] sm:$0xf] }
 0x4d0   :  { %1942 = vmatpush.bf16.msrb.mxu0 %v3127_v20  ;;  %v3103_v5 = vor.u32 %v3421_v2, %v3102_v61 }
 0x4d1   :  { %1955 = vmatpush.bf16.msra.mxu1 %v3199_v1  ;;  %v3436_v1 = vld [vmem:[#allocation8 + $0x384] sm:$0xf] }
 0x4d3   :  { %1983 = vmatpush.bf16.msrb.mxu3 %v3203_v16  ;;  %v3171_v16 = vor.u32 %v3436_v1, %v3168_v3 }
 0x4d4   :  { %1943 = vmatpush.bf16.msrb.mxu0 %v3119_v34  ;;  %v1581_v34 = vld [vmem:[#allocation13 + $0x4] sm:$0x3] }
 0x4d5   :  { %1956 = vmatpush.bf16.msra.mxu1 %v3191_v25 }
 0x4d7   :  { %1984 = vmatpush.bf16.msrb.mxu3 %v3195_v29 }
 0x4d9   :  { %1957 = vmatpush.bf16.msra.mxu1 %v3183_v41 }
 0x4db   :  { %1985 = vmatpush.bf16.msrb.mxu3 %v3187_v40 }
 0x4dd   :  { %1958 = vmatpush.bf16.msra.mxu1 %v3175_v57 }
 0x4df   :  { %1986 = vmatpush.bf16.msrb.mxu3 %v3179_v47 }
 0x4e3   :  { %1987 = vmatpush.bf16.msrb.mxu3 %v3171_v16 }
 0x53b   :  { %v1599_v23 = vpop.f32.mrf.mxu0 }
 0x53c   :  { %v4194_v27 = vmul.f32 0.0625, %v1599_v23  ;;  %v3128_v23 = vld [vmem:[#allocation8 + $0x338] sm:$0xf0] }
 0x53d   :  { %v3131_v28 = vor.u32 %v3426_v22, %v3128_v23 }
 0x53e   :  { %v1670_v45 = vmul.f32 %v4194_v27, %v4194_v27 }
 0x53f   :  { %1970 = vmatpush.bf16.msra.mxu2 %v3131_v28 }
 0x541   :  { %v1619_v63 = vpop.f32.mrf.mxu1 }
 0x542   :  { %v4198_v8 = vmul.f32 0.0625, %v1619_v63  ;;  %v3110_v63 = vld [vmem:[#allocation8 + $0x310] sm:$0xf] }
 0x543   :  { %v1645_v59 = vpop.f32.mrf.mxu2  ;;  %1971 = vmatpush.bf16.msra.mxu2 %v3123_v39 }
 0x544   :  { %v1668_v7 = vmul.f32 0.0625, %v1645_v59  ;;  %v1671_v15 = vmul.f32 %v4198_v8, %v4198_v8  ;;  %v3112_v59 = vld [vmem:[#allocation8 + $0x318] sm:$0xf0] }
 0x545   :  { %v3115_v46 = vor.u32 %v3422_v62, %v3112_v59 }
 0x546   :  { %v1672_v48 = vsub.f32 %v1668_v7, %v1670_v45  ;;  %v3423_v45 = vld [vmem:[#allocation8 + $0x314] sm:$0xf0] }
 0x547   :  { %v3111_v55 = vor.u32 %v3423_v45, %v3110_v63  ;;  %1972 = vmatpush.bf16.msra.mxu2 %v3115_v46 }
 0x548   :  { %v4200_v14 = vadd.f32 1e-05, %v1672_v48  ;;  %v3166_v48 = vld [vmem:[#allocation8 + $0x380] sm:$0xf] }
 0x549   :  { %v1665_v19 = vpop.f32.mrf.mxu3  ;;  %1944 = vmatpush.bf16.msrb.mxu0 %v3111_v55  ;;  %v3167_v9 = vor.u32 %v3437_v49, %v3166_v48 }
 0x54a   :  { %3497 = vrsqrt.f32 %v4200_v14  ;;  %v1669_v24 = vmul.f32 0.0625, %v1665_v19  ;;  %vm1682_vm8 = vweird.f32 %v4200_v14 }
 0x54b   :  { %1959 = vmatpush.bf16.msra.mxu1 %v3167_v9 }
 0x54c   :  { %v1673_v33 = vsub.f32 %v1669_v24, %v1671_v15  ;;  %v3107_v15 = vor.u32 %v3420_v50, %v3104_v60 }
 0x54d   :  { %1945 = vmatpush.bf16.msrb.mxu0 %v3103_v5 }
 0x54e   :  { %v1675_v6 = vadd.f32 1e-05, %v1673_v33  ;;  %1973 = vmatpush.bf16.msra.mxu2 %v3107_v15  ;;  %v2329_v15 = vld [vmem:[%s4515_s11 + $0x78] sm:$0xff] }
 0x550   :  { %v3498_v4 = vpop.eup %3497  ;;  %3499 = vrsqrt.f32 %v1675_v6  ;;  %vm1692_vm10 = vweird.f32 %v1675_v6 }
 0x551   :  { %v1677_v7 = vmul.f32 %v3498_v4, %v4200_v14  ;;  %vm1683_vm9 = vweird.f32 %v3498_v4 }
 0x552   :  { %vm1684_vm12 = vmor %vm1682_vm8, %vm1683_vm9 }
 0x553   :  { %v1678_v51 = vmul.f32 %v3498_v4, %v1677_v7 }
 0x555   :  { %v1679_v17 = vmul.f32 0.5, %v1678_v51 }
 0x556   :  { %v3500_v11 = vpop.eup %3499 }
 0x557   :  { %v1687_v18 = vmul.f32 %v3500_v11, %v1675_v6  ;;  %v1680_v20 = vsub.f32 1.5, %v1679_v17  ;;  %vm1693_vm6 = vweird.f32 %v3500_v11 }
 0x558   :  { %vm1694_vm11 = vmor %vm1692_vm10, %vm1693_vm6 }
 0x559   :  { %v1688_v19 = vmul.f32 %v3500_v11, %v1687_v18  ;;  %v1681_v23 = vmul.f32 %v3498_v4, %v1680_v20 }
 0x55b   :  { %v1689_v21 = vmul.f32 0.5, %v1688_v19  ;;  %v1685_v28 = vsel %vm1684_vm12, %v3498_v4, %v1681_v23  ;;  %v2328_v19 = vld [vmem:[%s4515_s11 + $0x70] sm:$0xff]  ;;  %v2326_v23 = vld [vmem:[%s4515_s11 + $0x60] sm:$0xff]  ;;  %vm2476_vm12 = vcmp.lt.s32.totalorder %v4016_v54, 18 }
 0x55d   :  { %v1690_v22 = vsub.f32 1.5, %v1689_v21  ;;  %v2327_v21 = vld [vmem:[%s4515_s11 + $0x68] sm:$0xff] }
 0x55f   :  { %v1691_v24 = vmul.f32 %v3500_v11, %v1690_v22 }
 0x561   :  { %v1695_v25 = vsel %vm1694_vm11, %v3500_v11, %v1691_v24  ;;  %v2325_v24 = vld [vmem:[%s4515_s11 + $0x58] sm:$0xff] }
 0x562   :  { %v1698_v10 = vrot.slane %v1695_v25, 7  ;;  %v2324_v25 = vld [vmem:[%s4515_s11 + $0x50] sm:$0xff] }
 0x564   :  { %v1699_v29 = vsel %vm454_vm7, %v1685_v28, %v1698_v10  ;;  %v2322_v10 = vld [vmem:[%s4515_s11 + $0x40] sm:$0xff]  ;;  %v2320_v28 = vld [vmem:[%s4515_s11 + $0x30] sm:$0xff] }
 0x565   :  { %v1701_v30 = vmul.f32 %v1699_v29, %v1579_v26  ;;  %v2323_v26 = vld [vmem:[%s4515_s11 + $0x48] sm:$0xff] }
 0x566   :  { %v2319_v29 = vld [vmem:[%s4515_s11 + $0x28] sm:$0xff] }
 0x567   :  { %v1704_v32 = vperm.slane %v1701_v30, 1  ;;  %v1703_v42 = vperm.slane %v1701_v30, 0  ;;  %v2318_v30 = vld [vmem:[%s4515_s11 + $0x20] sm:$0xff] }
 0x569   :  { %v1708_v33 = vmul.f32 %v1704_v32, %v4198_v8  ;;  %v1707_v14 = vmul.f32 %v1703_v42, %v4194_v27  ;;  %v1715_v41 = vmul.f32 %v1703_v42, %v4166_v52  ;;  %v1717_v31 = vmul.f32 %v1703_v42, %v4168_v58  ;;  %v2316_v42 = vld [vmem:[%s4515_s11 + $0x10] sm:$0xff] }
 0x56a   :  { %v1716_v63 = vmul.f32 %v1704_v32, %v4178_v12  ;;  %v1718_v6 = vmul.f32 %v1704_v32, %v4180_v13  ;;  %v1772_v12 = vld [vmem:[#allocation10 + $0x6] sm:$0x3] }
 0x56b   :  { %v1711_v35 = vrot.slane %v1708_v33, 7  ;;  %v1774_v57 = vperm.slane %v1772_v12, 0  ;;  %v1775_v48 = vperm.slane %v1772_v12, 1  ;;  %v2317_v32 = vld [vmem:[%s4515_s11 + $0x18] sm:$0xff]  ;;  %v2315_v33 = vld [vmem:[%s4515_s11 + $0x8] sm:$0xff] }
 0x56d   :  { %v1712_v36 = vsel %vm454_vm7, %v1707_v14, %v1711_v35  ;;  %v4291_v14 = vld [vmem:[#allocation2] sm:$0xff]  ;;  %v4294_v35 = vld [vmem:[#allocation2 + $0x8] sm:$0xff] }
 0x56e   :  { %v1714_v37 = vsub.f32 %v1581_v34, %v1712_v36  ;;  %v2314_v34 = vld [vmem:[%s4515_s11] sm:$0xff]  ;;  %v2360_v36 = vld [vmem:[%s4516_s12 + $0x28] sm:$0x1f] }
 0x570   :  { %v1720_v38 = vperm.slane %v1714_v37, 0  ;;  %v1721_v39 = vperm.slane %v1714_v37, 1  ;;  %v3459_v37 = vld [vmem:[%s4513_s9 + $0x38] sm:$0xff] }
 0x572   :  { %v1724_v40 = vadd.f32 %v1720_v38, %v1715_v41  ;;  %v1726_v45 = vadd.f32 %v1720_v38, %v1717_v31  ;;  %v1725_v8 = vadd.f32 %v1721_v39, %v1716_v63  ;;  %v1727_v43 = vadd.f32 %v1721_v39, %v1718_v6  ;;  %v3467_v41 = vld [vmem:[%s4513_s9 + $0x78] sm:$0xff]  ;;  %v2359_v38 = vld [vmem:[%s4516_s12 + $0x20] sm:$0xff]  ;;  %v3458_v6 = vld [vmem:[%s4513_s9 + $0x30] sm:$0xff] }
 0x573   :  { %v2358_v63 = vld [vmem:[%s4516_s12 + $0x18] sm:$0xff]  ;;  %v3466_v39 = vld [vmem:[%s4513_s9 + $0x70] sm:$0xff] }
 0x574   :  { %v1728_v44 = vmul.f32 0.01, %v1724_v40  ;;  %v1730_v27 = vmul.f32 0.01, %v1726_v45  ;;  %v1729_v62 = vmul.f32 0.01, %v1725_v8 }
 0x575   :  { %v1731_v59 = vmul.f32 0.01, %v1727_v43 }
 0x576   :  { %v1732_v4 = vmax.f32 %v1724_v40, %v1728_v44  ;;  %v1734_v55 = vmax.f32 %v1726_v45, %v1730_v27  ;;  %v1733_v56 = vmax.f32 %v1725_v8, %v1729_v62  ;;  %v2357_v45 = vld [vmem:[%s4516_s12 + $0x10] sm:$0xff]  ;;  %v3457_v44 = vld [vmem:[%s4513_s9 + $0x28] sm:$0xff] }
 0x577   :  { %v1735_v52 = vmax.f32 %v1727_v43, %v1731_v59  ;;  %v2356_v43 = vld [vmem:[%s4516_s12 + $0x8] sm:$0xff] }
 0x578   :  { %v1736_v53 = vpack.c.bf16 %v1734_v55, %v1732_v4  ;;  %v3465_v27 = vld [vmem:[%s4513_s9 + $0x68] sm:$0xff]  ;;  %v2355_v55 = vld [vmem:[%s4516_s12] sm:$0xff] }
 0x579   :  { %v1737_v58 = vpack.c.bf16 %v1735_v52, %v1733_v56  ;;  %v3456_v52 = vld [vmem:[%s4513_s9 + $0x20] sm:$0xff] }
 0x57a   :  { %1946 = vmatmul.bf16.vlgmr.msrb.gmra.mxu0 %v1736_v53  ;;  %1974 = vmatmul.bf16.vlgmr.msra.gmra.mxu2 %v1736_v53  ;;  %v3464_v53 = vld [vmem:[%s4513_s9 + $0x60] sm:$0xff] }
 0x57b   :  { %1960 = vmatmul.bf16.vlgmr.msra.gmra.mxu1 %v1737_v58  ;;  %1988 = vmatmul.bf16.vlgmr.msrb.gmra.mxu3 %v1737_v58 }
 0x5f7   :  { %v1947_v13 = vpop.f32.mrf.mxu0 }
 0x5f8   :  { %v1961_v7 = vpop.f32.mrf.mxu1  ;;  %v1948_v2 = vadd.f32 %v1947_v13, %v1774_v57 }
 0x5fa   :  { %v4215_v51 = vadd.f32 %v1961_v7, %v1948_v2  ;;  %v3463_v2 = vld [vmem:[%s4513_s9 + $0x58] sm:$0xff] }
 0x5fc   :  { %v2040_v11 = vmul.f32 %v4215_v51, %v4215_v51 }
 0x5fd   :  { %v1975_v61 = vpop.f32.mrf.mxu2 }
 0x5fe   :  { %v1989_v46 = vpop.f32.mrf.mxu3  ;;  %v1976_v1 = vadd.f32 %v1975_v61, %v1775_v48  ;;  %v3455_v61 = vld [vmem:[%s4513_s9 + $0x18] sm:$0xff] }
 0x5ff   :  { %v1949_v47 = vpop.f32.mrf.mxu0 }
 0x600   :  { %v1950_v49 = vadd.f32 %v1949_v47, %v1774_v57  ;;  %v1963_v50 = vpop.f32.mrf.mxu1  ;;  %v4230_v17 = vadd.f32 %v1989_v46, %v1976_v1  ;;  %v3454_v47 = vld [vmem:[%s4513_s9 + $0x10] sm:$0xff]  ;;  %v3461_v1 = vld [vmem:[%s4513_s9 + $0x48] sm:$0xff] }
 0x602   :  { %v4217_v60 = vadd.f32 %v1963_v50, %v1950_v49  ;;  %v2041_v22 = vmul.f32 %v4230_v17, %v4230_v17  ;;  %v3453_v50 = vld [vmem:[%s4513_s9 + $0x8] sm:$0xff] }
 0x604   :  { %v2042_v3 = vmul.f32 %v4217_v60, %v4217_v60  ;;  %2012 = vmatpush.msra.mxu0 %v4217_v60 }
 0x605   :  { %v1977_v5 = vpop.f32.mrf.mxu2 }
 0x606   :  { %v1978_v9 = vadd.f32 %v1977_v5, %v1775_v48  ;;  %2013 = vmatpush.msra.mxu0 %v4215_v51  ;;  %2058 = vmatpush.msrb.mxu2 %v2042_v3  ;;  %v1991_v16 = vpop.f32.mrf.mxu3  ;;  %v3462_v48 = vld [vmem:[%s4513_s9 + $0x50] sm:$0xff] }
 0x607   :  { %3228 = vmatmul.msk.f32.vlgmr.msra.gmra.mxu0 %vm333_vm1, %v4026_v0 }
 0x608   :  { %v4232_v18 = vadd.f32 %v1991_v16, %v1978_v9  ;;  %2059 = vmatpush.msrb.mxu2 %v2040_v11  ;;  %2286 = vmatpush.bf16.msrb.mxu0 %v3459_v37  ;;  %v3452_v11 = vld [vmem:[%s4513_s9] sm:$0xff] }
 0x609   :  { %3230 = vmatmul.msk.f32.vlgmr.msrb.gmra.mxu2 %vm333_vm1, %v4026_v0 }
 0x60a   :  { %2330 = vmatpush.msra.mxu2 %v2329_v15  ;;  %v2043_v20 = vmul.f32 %v4232_v18, %v4232_v18  ;;  %2032 = vmatpush.msrb.mxu1 %v4232_v18  ;;  %v3460_v15 = vld [vmem:[%s4513_s9 + $0x40] sm:$0xff] }
 0x60c   :  { %2331 = vmatpush.msra.mxu2 %v2328_v19  ;;  %2033 = vmatpush.msrb.mxu1 %v4230_v17 }
 0x60d   :  { %2078 = vmatpush.msra.mxu3 %v2043_v20  ;;  %3229 = vmatmul.msk.f32.vlgmr.msrb.gmra.mxu1 %vm333_vm1, %v4026_v0 }
 0x60e   :  { %2332 = vmatpush.msra.mxu2 %v2327_v21  ;;  %2300 = vmatpush.bf16.msra.mxu1 %v3467_v41 }
 0x60f   :  { %2079 = vmatpush.msra.mxu3 %v2041_v22  ;;  %2287 = vmatpush.bf16.msrb.mxu0 %v3458_v6 }
 0x610   :  { %3231 = vmatmul.msk.f32.vlgmr.msra.gmra.mxu3 %vm333_vm1, %v4026_v0  ;;  %2333 = vmatpush.msra.mxu2 %v2326_v23  ;;  %v2321_v0 = vld [vmem:[%s4515_s11 + $0x38] sm:$0xff]  ;;  %vm2368_vm1 = vcmask 1044480   ;;  %s3781_s11 = smov [#allocation17]  }
 0x611   :  { %3296 = vmatpush.msk.msrb.mxu3 %vm2368_vm1, %v2360_v36  ;;  %s2616_s12 = sshll.u32 %s3781_s11, 4  ;;  %s2617_s12 = int_to_ptr.vmem [resolvable:$true] %s2616_s12 }
 0x612   :  { %2334 = vmatpush.msra.mxu2 %v2325_v24  ;;  %2301 = vmatpush.bf16.msra.mxu1 %v3466_v39 }
 0x613   :  { %2383 = vmatpush.msrb.mxu3 %v2359_v38  ;;  %2288 = vmatpush.bf16.msrb.mxu0 %v3457_v44 }
 0x614   :  { %2335 = vmatpush.msra.mxu2 %v2324_v25 }
 0x615   :  { %2384 = vmatpush.msrb.mxu3 %v2358_v63 }
 0x616   :  { %2336 = vmatpush.msra.mxu2 %v2323_v26  ;;  %2302 = vmatpush.bf16.msra.mxu1 %v3465_v27 }
 0x617   :  { %2385 = vmatpush.msrb.mxu3 %v2357_v45  ;;  %2289 = vmatpush.bf16.msrb.mxu0 %v3456_v52 }
 0x618   :  { %2337 = vmatpush.msra.mxu2 %v2322_v10 }
 0x619   :  { %2386 = vmatpush.msrb.mxu3 %v2356_v43 }
 0x61a   :  { %2338 = vmatpush.msra.mxu2 %v2321_v0  ;;  %2303 = vmatpush.bf16.msra.mxu1 %v3464_v53  ;;  %v1995_v0 = vld [vmem:[#allocation11 + $0x6] sm:$0x3] }
 0x61b   :  { %2387 = vmatpush.msrb.mxu3 %v2355_v55  ;;  %2290 = vmatpush.bf16.msrb.mxu0 %v3455_v61 }
 0x61c   :  { %2339 = vmatpush.msra.mxu2 %v2320_v28 }
 0x61d   :  { %3299 = vmatpush.msk.msra.mxu3 %vm2368_vm1, %v2360_v36 }
 0x61e   :  { %2340 = vmatpush.msra.mxu2 %v2319_v29  ;;  %2304 = vmatpush.bf16.msra.mxu1 %v3463_v2 }
 0x61f   :  { %2442 = vmatpush.msra.mxu3 %v2359_v38  ;;  %2291 = vmatpush.bf16.msrb.mxu0 %v3454_v47  ;;  %v1997_v38 = vld [vmem:[#allocation13 + $0x6] sm:$0x3] }
 0x620   :  { %2341 = vmatpush.msra.mxu2 %v2318_v30  ;;  %v2506_v47 = vld [vmem:[%s4519_s15 + $0x68] sm:$0xff] }
 0x621   :  { %2443 = vmatpush.msra.mxu3 %v2358_v63 }
 0x622   :  { %2342 = vmatpush.msra.mxu2 %v2317_v32  ;;  %2305 = vmatpush.bf16.msra.mxu1 %v3462_v48 }
 0x623   :  { %2444 = vmatpush.msra.mxu3 %v2357_v45  ;;  %2292 = vmatpush.bf16.msrb.mxu0 %v3453_v50 }
 0x624   :  { %2343 = vmatpush.msra.mxu2 %v2316_v42 }
 0x625   :  { %2445 = vmatpush.msra.mxu3 %v2356_v43 }
 0x626   :  { %2344 = vmatpush.msra.mxu2 %v2315_v33  ;;  %2306 = vmatpush.bf16.msra.mxu1 %v3461_v1 }
 0x627   :  { %2446 = vmatpush.msra.mxu3 %v2355_v55  ;;  %2293 = vmatpush.bf16.msrb.mxu0 %v3452_v11 }
 0x628   :  { %2345 = vmatpush.msra.mxu2 %v2314_v34 }
 0x629   :  { %2346 = vmatmul.f32.vlgmr.msra.gmra.mxu2 %v4291_v14 }
 0x62a   :  { %2307 = vmatpush.bf16.msra.mxu1 %v3460_v15 }
 0x631   :  { %2349 = vmatmul.f32.gmra.mxu2 %v4294_v35 }
 0x684   :  { %v2015_v31 = vpop.f32.mrf.mxu0 }
 0x685   :  { %v4319_v40 = vmul.f32 0.0625, %v2015_v31 }
 0x687   :  { %v2086_v62 = vmul.f32 %v4319_v40, %v4319_v40 }
 0x68a   :  { %v2035_v8 = vpop.f32.mrf.mxu1 }
 0x68b   :  { %v4335_v59 = vmul.f32 0.0625, %v2035_v8 }
 0x68c   :  { %v2061_v4 = vpop.f32.mrf.mxu2 }
 0x68d   :  { %v2084_v56 = vmul.f32 0.0625, %v2061_v4  ;;  %v2087_v12 = vmul.f32 %v4335_v59, %v4335_v59 }
 0x68f   :  { %v2088_v58 = vsub.f32 %v2084_v56, %v2086_v62 }
 0x691   :  { %v2090_v13 = vadd.f32 1e-05, %v2088_v58 }
 0x693   :  { %v2081_v7 = vpop.f32.mrf.mxu3  ;;  %3501 = vrsqrt.f32 %v2090_v13  ;;  %vm2098_vm14 = vweird.f32 %v2090_v13 }
 0x694   :  { %v2085_v57 = vmul.f32 0.0625, %v2081_v7 }
 0x696   :  { %v2089_v46 = vsub.f32 %v2085_v57, %v2087_v12 }
 0x698   :  { %v2091_v49 = vadd.f32 1e-05, %v2089_v46  ;;  %v2507_v46 = vld [vmem:[%s4519_s15 + $0x70] sm:$0xff] }
 0x699   :  { %v3502_v3 = vpop.eup %3501 }
 0x69a   :  { %3503 = vrsqrt.f32 %v2091_v49  ;;  %v2093_v5 = vmul.f32 %v3502_v3, %v2090_v13  ;;  %vm2099_vm15 = vweird.f32 %v3502_v3  ;;  %vm2108_vm0 = vweird.f32 %v2091_v49 }
 0x69b   :  { %vm2100_vm3 = vmor %vm2098_vm14, %vm2099_vm15 }
 0x69c   :  { %v2094_v9 = vmul.f32 %v3502_v3, %v2093_v5  ;;  %v3483_v5 = vld [vmem:[%s4514_s10] ss:$0 sm:$0xff] }
 0x69e   :  { %v2095_v19 = vmul.f32 0.5, %v2094_v9 }
 0x6a0   :  { %v3504_v16 = vpop.eup %3503  ;;  %v2096_v22 = vsub.f32 1.5, %v2095_v19 }
 0x6a1   :  { %v2103_v20 = vmul.f32 %v3504_v16, %v2091_v49  ;;  %vm2109_vm13 = vweird.f32 %v3504_v16 }
 0x6a2   :  { %v2097_v25 = vmul.f32 %v3502_v3, %v2096_v22  ;;  %vm2110_vm2 = vmor %vm2108_vm0, %vm2109_vm13 }
 0x6a3   :  { %v2104_v21 = vmul.f32 %v3504_v16, %v2103_v20 }
 0x6a4   :  { %v2101_v30 = vsel %vm2100_vm3, %v3502_v3, %v2097_v25 }
 0x6a5   :  { %v2105_v23 = vmul.f32 0.5, %v2104_v21 }
 0x6a7   :  { %v2106_v24 = vsub.f32 1.5, %v2105_v23 }
 0x6a9   :  { %v2107_v26 = vmul.f32 %v3504_v16, %v2106_v24 }
 0x6ab   :  { %v2111_v10 = vsel %vm2110_vm2, %v3504_v16, %v2107_v26 }
 0x6ac   :  { %v2114_v28 = vrot.slane %v2111_v10, 7  ;;  %v4373_v29 = vpop.f32.mrf.mxu2 }
 0x6ad   :  { %v2353_v32 = vmul.f32 %v4373_v29, %v4373_v29 }
 0x6ae   :  { %v2115_v42 = vsel %vm454_vm7, %v2101_v30, %v2114_v28 }
 0x6af   :  { %v2117_v33 = vmul.f32 %v2115_v42, %v1995_v0  ;;  %3297 = vmatmul.msk.f32.vlgmr.msrb.gmra.mxu3 %vm2361_vm4, %v2353_v32 }
 0x6b1   :  { %v2120_v34 = vperm.slane %v2117_v33, 1  ;;  %v2119_v36 = vperm.slane %v2117_v33, 0 }
 0x6b3   :  { %v2124_v37 = vmul.f32 %v2120_v34, %v4335_v59  ;;  %v2123_v63 = vmul.f32 %v2119_v36, %v4319_v40  ;;  %v2131_v8 = vmul.f32 %v2119_v36, %v4215_v51  ;;  %v2133_v43 = vmul.f32 %v2119_v36, %v4217_v60 }
 0x6b4   :  { %v4380_v41 = vpop.f32.mrf.mxu2  ;;  %v2132_v27 = vmul.f32 %v2120_v34, %v4230_v17  ;;  %v2134_v62 = vmul.f32 %v2120_v34, %v4232_v18  ;;  %v2508_v18 = vld [vmem:[%s4519_s15 + $0x78] sm:$0xff] }
 0x6b5   :  { %v2354_v31 = vmul.f32 %v4380_v41, %v4380_v41  ;;  %v2127_v6 = vrot.slane %v2124_v37, 7  ;;  %2509 = vmatpush.msra.mxu0 %v2508_v18 }
 0x6b7   :  { %3298 = vmatmul.msk.f32.gmra.mxu3 %vm2361_vm4, %v2354_v31  ;;  %v2128_v39 = vsel %vm454_vm7, %v2123_v63, %v2127_v6  ;;  %2510 = vmatpush.msra.mxu0 %v2507_v46  ;;  %v2505_v6 = vld [vmem:[%s4519_s15 + $0x60] sm:$0xff] }
 0x6b8   :  { %v2130_v45 = vsub.f32 %v1997_v38, %v2128_v39  ;;  %v2504_v39 = vld [vmem:[%s4519_s15 + $0x58] sm:$0xff] }
 0x6b9   :  { %2511 = vmatpush.msra.mxu0 %v2506_v47 }
 0x6ba   :  { %v2136_v44 = vperm.slane %v2130_v45, 0  ;;  %v2137_v59 = vperm.slane %v2130_v45, 1  ;;  %v2502_v45 = vld [vmem:[%s4519_s15 + $0x48] sm:$0xff] }
 0x6bb   :  { %2512 = vmatpush.msra.mxu0 %v2505_v6 }
 0x6bc   :  { %v2140_v4 = vadd.f32 %v2136_v44, %v2131_v8  ;;  %v2142_v55 = vadd.f32 %v2136_v44, %v2133_v43  ;;  %v2141_v56 = vadd.f32 %v2137_v59, %v2132_v27  ;;  %v2143_v40 = vadd.f32 %v2137_v59, %v2134_v62  ;;  %v2501_v8 = vld [vmem:[%s4519_s15 + $0x40] sm:$0xff]  ;;  %v2500_v43 = vld [vmem:[%s4519_s15 + $0x38] sm:$0xff]  ;;  %v2499_v44 = vld [vmem:[%s4519_s15 + $0x30] sm:$0xff] }
 0x6bd   :  { %2513 = vmatpush.msra.mxu0 %v2504_v39  ;;  %v2498_v27 = vld [vmem:[%s4519_s15 + $0x28] sm:$0xff]  ;;  %v2492_v62 = vld [vmem:[#allocation14 + $0x28] sm:$0x1f] }
 0x6be   :  { %v2144_v52 = vmul.f32 0.01, %v2140_v4  ;;  %v2146_v53 = vmul.f32 0.01, %v2142_v55  ;;  %v2145_v58 = vmul.f32 0.01, %v2141_v56  ;;  %3302 = vmatpush.msk.msrb.mxu1 %vm2368_vm1, %v2492_v62 }
 0x6bf   :  { %v2147_v12 = vmul.f32 0.01, %v2143_v40  ;;  %v2569_v59 = vld [vmem:[#allocation16 + $0x28] sm:$0x1f] }
 0x6c0   :  { %v2148_v13 = vmax.f32 %v2140_v4, %v2144_v52  ;;  %v2150_v7 = vmax.f32 %v2142_v55, %v2146_v53  ;;  %v2149_v57 = vmax.f32 %v2141_v56, %v2145_v58  ;;  %3305 = vmatpush.msk.msrb.mxu3 %vm2368_vm1, %v2569_v59  ;;  %v2497_v4 = vld [vmem:[%s4519_s15 + $0x20] sm:$0xff]  ;;  %v2491_v55 = vld [vmem:[#allocation14 + $0x20] sm:$0xff]  ;;  %v2567_v53 = vld [vmem:[#allocation16 + $0x18] sm:$0xff]  ;;  %vm2477_vm1 = vcmp.ge.s32.totalorder %v4016_v54, 24 }
 0x6c1   :  { %v2151_v51 = vmax.f32 %v2143_v40, %v2147_v12  ;;  %v2568_v56 = vld [vmem:[#allocation16 + $0x20] sm:$0xff]  ;;  %2552 = vmatpush.msrb.mxu1 %v2491_v55  ;;  %v2490_v52 = vld [vmem:[#allocation14 + $0x18] sm:$0xff]  ;;  %v2495_v58 = vld [vmem:[%s4519_s15 + $0x10] sm:$0xff] }
 0x6c2   :  { %v2152_v61 = vpack.c.bf16 %v2150_v7, %v2148_v13  ;;  %2590 = vmatpush.msrb.mxu3 %v2568_v56  ;;  %v2496_v40 = vld [vmem:[%s4519_s15 + $0x18] sm:$0xff]  ;;  %v2566_v13 = vld [vmem:[#allocation16 + $0x10] sm:$0xff]  ;;  %vm4474_vm15 = vmor %vm2476_vm12, %vm2477_vm1 }
 0x6c3   :  { %v2153_v60 = vpack.c.bf16 %v2151_v51, %v2149_v57  ;;  %2553 = vmatpush.msrb.mxu1 %v2490_v52  ;;  %v2489_v12 = vld [vmem:[#allocation14 + $0x10] sm:$0xff]  ;;  %v2494_v7 = vld [vmem:[%s4519_s15 + $0x8] sm:$0xff]  ;;  %v2488_v57 = vld [vmem:[#allocation14 + $0x8] sm:$0xff] }
 0x6c4   :  { %2294 = vmatmul.bf16.vlgmr.msrb.gmra.mxu0 %v2152_v61  ;;  %2591 = vmatpush.msrb.mxu3 %v2567_v53  ;;  %v2565_v51 = vld [vmem:[#allocation16 + $0x8] sm:$0xff] }
 0x6c5   :  { %2308 = vmatmul.bf16.vlgmr.msra.gmra.mxu1 %v2153_v60  ;;  %v2493_v61 = vld [vmem:[%s4519_s15] sm:$0xff]  ;;  %v2487_v60 = vld [vmem:[#allocation14] sm:$0xff] }
 0x6c6   :  { %2554 = vmatpush.msrb.mxu1 %v2489_v12  ;;  %2592 = vmatpush.msrb.mxu3 %v2566_v13 }
 0x6c8   :  { %2555 = vmatpush.msrb.mxu1 %v2488_v57  ;;  %2593 = vmatpush.msrb.mxu3 %v2565_v51 }
 0x6ca   :  { %2556 = vmatpush.msrb.mxu1 %v2487_v60 }
 0x732   :  { %v2389_v17 = vpop.f32.mrf.mxu3 }
 0x733   :  { %v2395_v2 = vadd.f32 1e-12, %v2389_v17 }
 0x735   :  { %3505 = vrsqrt.f32 %v2395_v2  ;;  %vm2403_vm5 = vweird.f32 %v2395_v2 }
 0x73a   :  { %v4400_v48 = vpop.f32.mrf.mxu3 }
 0x73b   :  { %v3506_v49 = vpop.eup %3505  ;;  %v2396_v50 = vadd.f32 1e-12, %v4400_v48 }
 0x73c   :  { %v2398_v1 = vmul.f32 %v3506_v49, %v2395_v2  ;;  %vm2404_vm7 = vweird.f32 %v3506_v49 }
 0x73d   :  { %3507 = vrsqrt.f32 %v2396_v50  ;;  %vm2405_vm6 = vmor %vm2403_vm5, %vm2404_vm7  ;;  %vm2413_vm9 = vweird.f32 %v2396_v50 }
 0x73e   :  { %v2399_v3 = vmul.f32 %v3506_v49, %v2398_v1 }
 0x740   :  { %v2400_v9 = vmul.f32 0.5, %v2399_v3 }
 0x741   :  { %v2295_v11 = vpop.f32.mrf.mxu0 }
 0x742   :  { %v2401_v15 = vsub.f32 1.5, %v2400_v9  ;;  %v2296_v19 = vadd.f32 %v3483_v5, %v2295_v11  ;;  %v2309_v22 = vpop.f32.mrf.mxu1 }
 0x743   :  { %v3508_v16 = vpop.eup %3507 }
 0x744   :  { %v2402_v20 = vmul.f32 %v3506_v49, %v2401_v15  ;;  %v2408_v21 = vmul.f32 %v3508_v16, %v2396_v50  ;;  %v2310_v10 = vadd.f32 %v2309_v22, %v2296_v19  ;;  %vm2414_vm8 = vweird.f32 %v3508_v16 }
 0x745   :  { %vm2415_vm10 = vmor %vm2413_vm9, %vm2414_vm8 }
 0x746   :  { %v2406_v23 = vsel %vm2405_vm6, %v3506_v49, %v2402_v20  ;;  %v2409_v24 = vmul.f32 %v3508_v16, %v2408_v21 }
 0x747   :  { %v4407_v25 = vmul.f32 %v2406_v23, %v4373_v29  ;;  %v4409_v26 = vmul.f32 %v2406_v23, %v2389_v17  ;;  %v2564_v17 = vld [vmem:[#allocation16] sm:$0xff] }
 0x748   :  { %v2410_v0 = vmul.f32 0.5, %v2409_v24  ;;  %2594 = vmatpush.msrb.mxu3 %v2564_v17 }
 0x749   :  { %v4412_v28 = vadd.f32 %v4407_v25, %v2310_v10  ;;  %v2297_v30 = vpop.f32.mrf.mxu0 }
 0x74a   :  { %v2411_v32 = vsub.f32 1.5, %v2410_v0  ;;  %v2298_v33 = vadd.f32 %v3483_v5, %v2297_v30  ;;  %v2311_v36 = vpop.f32.mrf.mxu1 }
 0x74b   :  { %v2423_v42 = vmul.f32 %v4412_v28, %v4412_v28 }
 0x74c   :  { %v2412_v34 = vmul.f32 %v3508_v16, %v2411_v32  ;;  %v2312_v31 = vadd.f32 %v2311_v36, %v2298_v33 }
 0x74d   :  { %3300 = vmatmul.msk.f32.vlgmr.msra.gmra.mxu3 %vm2361_vm4, %v2423_v42 }
 0x74e   :  { %v4417_v29 = vsel %vm2415_vm10, %v3508_v16, %v2412_v34  ;;  %v3484_v34 = vld [vmem:[%s4520_s16] ss:$0 sm:$0xff] }
 0x74f   :  { %v4421_v37 = vmul.f32 %v4417_v29, %v4380_v41  ;;  %v2503_v41 = vld [vmem:[%s4519_s15 + $0x50] sm:$0xff] }
 0x750   :  { %2514 = vmatpush.msra.mxu0 %v2503_v41 }
 0x751   :  { %v4424_v38 = vadd.f32 %v4421_v37, %v2312_v31 }
 0x752   :  { %2515 = vmatpush.msra.mxu0 %v2502_v45 }
 0x753   :  { %v2424_v63 = vmul.f32 %v4424_v38, %v4424_v38 }
 0x754   :  { %2516 = vmatpush.msra.mxu0 %v2501_v8 }
 0x755   :  { %3301 = vmatmul.msk.f32.gmra.mxu3 %vm2361_vm4, %v2424_v63 }
 0x756   :  { %2517 = vmatpush.msra.mxu0 %v2500_v43 }
 0x758   :  { %2518 = vmatpush.msra.mxu0 %v2499_v44 }
 0x75a   :  { %2519 = vmatpush.msra.mxu0 %v2498_v27 }
 0x75c   :  { %2520 = vmatpush.msra.mxu0 %v2497_v4 }
 0x75e   :  { %2521 = vmatpush.msra.mxu0 %v2496_v40 }
 0x760   :  { %2522 = vmatpush.msra.mxu0 %v2495_v58 }
 0x762   :  { %2523 = vmatpush.msra.mxu0 %v2494_v7 }
 0x764   :  { %2524 = vmatpush.msra.mxu0 %v2493_v61 }
 0x765   :  { %2525 = vmatmul.f32.vlgmr.msra.gmra.mxu0 %v4291_v14 }
 0x76d   :  { %2528 = vmatmul.f32.gmra.mxu0 %v4294_v35 }
 0x7d0   :  { %v2448_v2 = vpop.f32.mrf.mxu3 }
 0x7d1   :  { %v2449_v18 = vadd.f32 1e-12, %v2448_v2 }
 0x7d3   :  { %3509 = vrsqrt.f32 %v2449_v18  ;;  %vm2460_vm13 = vweird.f32 %v2449_v18 }
 0x7d8   :  { %v2451_v46 = vpop.f32.mrf.mxu3 }
 0x7d9   :  { %v3510_v47 = vpop.eup %3509  ;;  %v2452_v49 = vadd.f32 1e-12, %v2451_v46 }
 0x7da   :  { %v2455_v50 = vmul.f32 %v3510_v47, %v2449_v18  ;;  %vm2461_vm11 = vweird.f32 %v3510_v47 }
 0x7db   :  { %3511 = vrsqrt.f32 %v2452_v49  ;;  %vm2462_vm14 = vmor %vm2460_vm13, %vm2461_vm11  ;;  %vm2470_vm2 = vweird.f32 %v2452_v49 }
 0x7dc   :  { %v2456_v1 = vmul.f32 %v3510_v47, %v2455_v50 }
 0x7de   :  { %v2457_v3 = vmul.f32 0.5, %v2456_v1 }
 0x7e0   :  { %v2458_v5 = vsub.f32 1.5, %v2457_v3 }
 0x7e1   :  { %v3512_v9 = vpop.eup %3511 }
 0x7e2   :  { %v2459_v14 = vmul.f32 %v3510_v47, %v2458_v5  ;;  %v2465_v11 = vmul.f32 %v3512_v9, %v2452_v49  ;;  %vm2471_vm0 = vweird.f32 %v3512_v9  ;;  %v2526_v32 = vpop.f32.mrf.mxu0 }
 0x7e3   :  { %vm2472_vm3 = vmor %vm2470_vm2, %vm2471_vm0 }
 0x7e4   :  { %v2463_v15 = vsel %vm2462_vm14, %v3510_v47, %v2459_v14  ;;  %v2466_v35 = vmul.f32 %v3512_v9, %v2465_v11 }
 0x7e5   :  { %v2474_v19 = vmul.f32 %v2463_v15, %v4412_v28  ;;  %v2420_v28 = vmul.f32 %v4417_v29, %v4400_v48 }
 0x7e6   :  { %v2467_v20 = vmul.f32 0.5, %v2466_v35 }
 0x7e7   :  { %v2481_v21 = vsel %vm4474_vm15, %v2474_v19, %v4407_v25 }
 0x7e8   :  { %v2468_v22 = vsub.f32 1.5, %v2467_v20  ;;  %v2485_v54 = vmul.f32 %v2481_v21, %v4409_v26  ;;  %v2483_v23 = vmul.f32 %v2481_v21, %v4407_v25 }
 0x7ea   :  { %v2469_v24 = vmul.f32 %v3512_v9, %v2468_v22  ;;  %3303 = vmatmul.msk.f32.vlgmr.msrb.gmra.mxu1 %vm2361_vm4, %v2485_v54  ;;  %3306 = vmatmul.msk.f32.vlgmr.msrb.gmra.mxu3 %vm2361_vm4, %v2483_v23  ;;  %v2529_v31 = vpop.f32.mrf.mxu0 }
 0x7ec   :  { %v2473_v10 = vsel %vm2472_vm3, %v3512_v9, %v2469_v24 }
 0x7ed   :  { %v2475_v0 = vmul.f32 %v2473_v10, %v4424_v38 }
 0x7ef   :  { %v2482_v30 = vsel %vm4474_vm15, %v2475_v0, %v4421_v37 }
 0x7f0   :  { %v2486_v26 = vmul.f32 %v2482_v30, %v2420_v28  ;;  %v2484_v25 = vmul.f32 %v2482_v30, %v4421_v37 }
 0x7f2   :  { %3304 = vmatmul.msk.f32.gmra.mxu1 %vm2361_vm4, %v2486_v26  ;;  %3307 = vmatmul.msk.f32.gmra.mxu3 %vm2361_vm4, %v2484_v25 }
 0x867   :  { %v2558_v42 = vpop.f32.mrf.mxu1 }
 0x868   :  { %v2559_v33 = vadd.f32 %v2558_v42, %v2526_v32 }
 0x86d   :  { %v2596_v36 = vpop.f32.mrf.mxu3 }
 0x86e   :  { %v2602_v48 = vadd.f32 %v2596_v36, %v2559_v33 }
 0x86f   :  { %v2561_v38 = vpop.f32.mrf.mxu1 }
 0x870   :  { %v2608_v29 = vadd.f32 %v3484_v34, %v2602_v48  ;;  %v2562_v63 = vadd.f32 %v2561_v38, %v2529_v31 }
 0x872   :  { %2610 = vst [vmem:[#allocation17] sm:$0xff] %v2608_v29 }
 0x875   :  { %v2599_v6 = vpop.f32.mrf.mxu3 }
 0x876   :  { %v2603_v37 = vadd.f32 %v2599_v6, %v2562_v63 }
 0x878   :  { %v2609_v39 = vadd.f32 %v3484_v34, %v2603_v37 }
 0x87a   :  { %2611 = vst [vmem:[#allocation17 + $0x8] sm:$0xff] %v2609_v39 }
 0x87b   :  { %2624 = dma.vmem_to_hbm [thread:$0]  %s2617_s12, 256, %s2619_s14, [#allocation4], %s3769_s1, %s3769_s1, %s3770_s20  }
 0x87c   :  { %3765 = dma.done.wait [#allocation4], 256  }
 0x87d   :  { %3766 = vsyncadd [#allocation4], 4294967040 }
 0x87e   :  { %2629 = vsyncpa [#allocation3], 1 }
 0x87f   :  { %2630 = vsyncpa [#allocation6], 1 }
 0x880   :  { %2631 = vsyncpa [#allocation9], 1 }
 0x881   :  { %2632 = vsyncpa [#allocation12], 1 }
 0x882   :  { %2633 = vsyncpa [#allocation15], 1 }
 0x883   :  { %2634 = vsyncpa [#allocation4], 1 }

</bundles_post_ra>
